<compile_context>
chip_gen: v5e
topology: v5e:2x2
jax: 0.10.0
libtpu: 0.0.40
codegen_flags: <defaults>
</compile_context>

<pallas_src>
import functools

import jax
import jax.numpy as jnp
from jax import lax
from jax.experimental import pallas as pl
from jax.experimental.pallas import tpu as pltpu


def _round_up(x, m):
    return (x + m - 1) // m * m


# -----------------------------------------------------------------------------
# Kernel: whole sequence fused (pre-pass matmul, serial GRU loop, post-pass fc)
# -----------------------------------------------------------------------------
def _skipgram_fused_kernel(x_ref, h0_ref,
                           wih_ref, whh_ref, bih_ref, bhh_ref,
                           wfc_ref, bfc_ref,
                           probs_ref, hseq_ref,
                           gi_scr, *, hp, t_len):
    # ---- Pre-pass: batched input projection (off the serial critical path) --
    gi_scr[...] = (jnp.dot(x_ref[...], wih_ref[...],
                           preferred_element_type=jnp.float32) + bih_ref[...])

    whh = whh_ref[...]
    bhh = bhh_ref[...]

    # ---- Serial GRU recurrence: unrolled in-kernel loop (T is static) -------
    def step(t, carry):
        h, h_bf = carry                         # prev normalized hidden (f32, bf16)
        gi = gi_scr[pl.ds(t, 1), :]             # (1, 3*Hp)
        gh = jnp.dot(h_bf, whh, preferred_element_type=jnp.float32) + bhh
        # PyTorch GRU gates (order r, z, n); r/z share one fused add+sigmoid.
        rz = jax.nn.sigmoid(gi[:, :2 * hp] + gh[:, :2 * hp])
        r = rz[:, :hp]
        z = rz[:, hp:]
        n = jnp.tanh(gi[:, 2 * hp:] + r * gh[:, 2 * hp:])
        h_new = (1.0 - z) * n + z * h
        # new_hidden = new_hidden / ||new_hidden||_F  (rsqrt on the EUP; tiny
        # epsilon guards the degenerate all-zero case without affecting math).
        inv_norm = lax.rsqrt(jnp.sum(h_new * h_new, keepdims=True) + 1e-30)
        h_norm = h_new * inv_norm
        hseq_ref[pl.ds(t, 1), :] = h_norm       # VMEM store; HBM writeback once
        return h_norm, h_norm.astype(jnp.bfloat16)

    h0 = h0_ref[...]
    lax.fori_loop(0, t_len, step, (h0, h0.astype(jnp.bfloat16)), unroll=True)

    # ---- Post-pass: batched fc + row softmax over the whole sequence --------
    h_all_bf = hseq_ref[...].astype(jnp.bfloat16)          # (T, Hp)
    logits = (jnp.dot(h_all_bf, wfc_ref[...],
                      preferred_element_type=jnp.float32) + bfc_ref[...])
    m = jnp.max(logits, axis=1, keepdims=True)
    e = jnp.exp(logits - m)
    probs_ref[...] = e * pl.reciprocal(jnp.sum(e, axis=1, keepdims=True),
                                       approx=False)


# -----------------------------------------------------------------------------
# Parameters
# -----------------------------------------------------------------------------
def init_params(key, input_size, embedding_size, hidden_size):
    """Deterministic synthetic parameters (shapes match nn.Embedding/GRU/Linear)."""
    ks = jax.random.split(key, 7)
    k_gru = 1.0 / jnp.sqrt(hidden_size)
    k_fc = 1.0 / jnp.sqrt(hidden_size)
    return {
        # nn.Embedding(input_size, embedding_size)
        "emb": jax.random.normal(ks[0], (input_size, embedding_size), jnp.float32),
        # nn.GRU(embedding_size, hidden_size) — stored transposed: (in, 3H)
        "w_ih": jax.random.uniform(ks[1], (embedding_size, 3 * hidden_size),
                                   jnp.float32, -k_gru, k_gru),
        "w_hh": jax.random.uniform(ks[2], (hidden_size, 3 * hidden_size),
                                   jnp.float32, -k_gru, k_gru),
        "b_ih": jax.random.uniform(ks[3], (1, 3 * hidden_size),
                                   jnp.float32, -k_gru, k_gru),
        "b_hh": jax.random.uniform(ks[4], (1, 3 * hidden_size),
                                   jnp.float32, -k_gru, k_gru),
        # nn.Linear(hidden_size, input_size) — stored transposed: (H, V)
        "w_fc": jax.random.uniform(ks[5], (hidden_size, input_size),
                                   jnp.float32, -k_fc, k_fc),
        "b_fc": jax.random.uniform(ks[6], (1, input_size),
                                   jnp.float32, -k_fc, k_fc),
    }


def prepare_params(params):
    """Pad feature dims to multiples of 128 (lane-aligned, zero-padded so the
    math is unchanged) and cast matmul weights to bf16."""
    emb, w_ih, w_hh = params["emb"], params["w_ih"], params["w_hh"]
    b_ih, b_hh, w_fc, b_fc = (params["b_ih"], params["b_hh"],
                              params["w_fc"], params["b_fc"])
    vocab, E = emb.shape
    H = w_hh.shape[0]
    V = w_fc.shape[1]
    Ep, Hp, Vp = _round_up(E, 128), _round_up(H, 128), _round_up(V, 128)

    def pad2(a, r, c):
        return jnp.pad(a, ((0, r - a.shape[0]), (0, c - a.shape[1])))

    def pad_gates(w, rows_p):   # (rows, 3H) -> (rows_p, 3*Hp), per-gate aligned
        return jnp.concatenate(
            [pad2(w[:, g * H:(g + 1) * H], rows_p, Hp) for g in range(3)], axis=1)

    return {
        "E": E, "H": H, "V": V, "Ep": Ep, "Hp": Hp, "Vp": Vp,
        "emb": pad2(emb, vocab, Ep).astype(jnp.bfloat16),           # (vocab, Ep)
        "w_ih": pad_gates(w_ih, Ep).astype(jnp.bfloat16),
        "w_hh": pad_gates(w_hh, Hp).astype(jnp.bfloat16),
        "b_ih": pad_gates(b_ih, 1).astype(jnp.float32),
        "b_hh": pad_gates(b_hh, 1).astype(jnp.float32),
        "w_fc": pad2(w_fc, Hp, Vp).astype(jnp.bfloat16),
        # padded vocab lanes get a huge negative bias -> softmax prob exactly 0
        "b_fc": jnp.concatenate(
            [b_fc.astype(jnp.float32),
             jnp.full((1, Vp - V), -1e30, jnp.float32)], axis=1),
    }


# -----------------------------------------------------------------------------
# Wrappers
# -----------------------------------------------------------------------------
def skipgram_encoder_forward_seq(tokens, hidden0, prepped):
    """Run T recurrent steps (equivalent to calling the PyTorch forward T times,
    feeding the returned normalized hidden back in) in ONE fused pallas_call.

    tokens: (T,) int32; hidden0: (1, 1, H) f32.
    Returns probs (T, V) and hiddens (T, 1, H) (normalized hidden after each step).
    """
    Ep, Hp, Vp = prepped["Ep"], prepped["Hp"], prepped["Vp"]
    H, V = prepped["H"], prepped["V"]
    T = int(tokens.shape[0])

    tokens = tokens.astype(jnp.int32)
    # Embedding gather is not on the serial path: do it once, batched, in the
    # wrapper and feed the (T, Ep) bf16 block straight into the kernel.
    x_emb = jnp.take(prepped["emb"], tokens, axis=0)

    h0 = jnp.zeros((1, Hp), jnp.float32).at[:, :H].set(
        hidden0.reshape(1, H).astype(jnp.float32))

    def spec(shape):
        zeros = (0,) * len(shape)
        return pl.BlockSpec(shape, lambda i: zeros)   # single-invocation block

    kernel = functools.partial(_skipgram_fused_kernel, hp=Hp, t_len=T)
    probs_p, hseq_p = pl.pallas_call(
        kernel,
        grid=(1,),
        in_specs=[
            spec((T, Ep)),        # embedded tokens
            spec((1, Hp)),        # h0
            spec((Ep, 3 * Hp)),   # w_ih
            spec((Hp, 3 * Hp)),   # w_hh
            spec((1, 3 * Hp)),    # b_ih
            spec((1, 3 * Hp)),    # b_hh
            spec((Hp, Vp)),       # w_fc
            spec((1, Vp)),        # b_fc
        ],
        out_specs=(
            spec((T, Vp)),        # probs for all steps
            spec((T, Hp)),        # normalized hidden for all steps
        ),
        out_shape=(jax.ShapeDtypeStruct((T, Vp), jnp.float32),
                   jax.ShapeDtypeStruct((T, Hp), jnp.float32)),
        scratch_shapes=[pltpu.VMEM((T, 3 * Hp), jnp.float32)],   # gi for all steps
        compiler_params=pltpu.CompilerParams(
            dimension_semantics=("arbitrary",)),
    )(x_emb, h0,
      prepped["w_ih"], prepped["w_hh"], prepped["b_ih"], prepped["b_hh"],
      prepped["w_fc"], prepped["b_fc"])

    return probs_p[:, :V], hseq_p[:, :H].reshape(T, 1, H)


def skipgram_encoder_forward(token, hidden, prepped):
    """Single-step call matching the PyTorch module's forward signature.
    Returns (probs (1, V), new_hidden (1, 1, H))."""
    tokens = jnp.reshape(jnp.asarray(token, jnp.int32), (1,))
    probs, hiddens = skipgram_encoder_forward_seq(tokens, hidden, prepped)
    return probs, hiddens[0].reshape(1, 1, prepped["H"])


# -----------------------------------------------------------------------------
# Pure-JAX reference (mirrors the kernel's mixed-precision math exactly)
# -----------------------------------------------------------------------------
def _reference_forward_seq(tokens, hidden0, prepped):
    Hp, H, V = prepped["Hp"], prepped["H"], prepped["V"]
    emb = prepped["emb"].astype(jnp.float32)
    w_ih = prepped["w_ih"].astype(jnp.float32)
    w_hh = prepped["w_hh"].astype(jnp.float32)
    w_fc = prepped["w_fc"].astype(jnp.float32)
    b_ih, b_hh, b_fc = prepped["b_ih"], prepped["b_hh"], prepped["b_fc"]

    def bf16_round(a):
        return a.astype(jnp.bfloat16).astype(jnp.float32)

    h = jnp.zeros((1, Hp), jnp.float32).at[:, :H].set(
        hidden0.reshape(1, H).astype(jnp.float32))
    probs_all, hid_all = [], []
    for t in range(tokens.shape[0]):
        x = emb[tokens[t]][None, :]
        gi = x @ w_ih + b_ih
        gh = bf16_round(h) @ w_hh + b_hh
        r = jax.nn.sigmoid(gi[:, :Hp] + gh[:, :Hp])
        z = jax.nn.sigmoid(gi[:, Hp:2 * Hp] + gh[:, Hp:2 * Hp])
        n = jnp.tanh(gi[:, 2 * Hp:] + r * gh[:, 2 * Hp:])
        h_new = (1.0 - z) * n + z * h
        inv_norm = lax.rsqrt(jnp.sum(h_new * h_new) + 1e-30)
        h_norm = h_new * inv_norm
        logits = bf16_round(h_norm) @ w_fc + b_fc
        probs = jax.nn.softmax(logits, axis=1)
        probs_all.append(probs[:, :V])
        hid_all.append(h_norm[:, :H])
        h = h_norm
    return jnp.concatenate(probs_all, axis=0), jnp.stack(hid_all, axis=0)


# -----------------------------------------------------------------------------
# Main
# -----------------------------------------------------------------------------
if __name__ == "__main__":
    input_size = 64       # vocabulary size
    embedding_size = 32
    hidden_size = 32
    seq_len = 8

    key = jax.random.PRNGKey(0)
    k_params, k_tok = jax.random.split(key, 2)

    params = init_params(k_params, input_size, embedding_size, hidden_size)
    prepped = prepare_params(params)

    tokens = jax.random.randint(k_tok, (seq_len,), 0, input_size, jnp.int32)
    hidden0 = jnp.zeros((1, 1, hidden_size), jnp.float32)   # initHidden()

    # Full recurrent sequence in a single fused pallas_call.
    probs_seq, hid_seq = skipgram_encoder_forward_seq(tokens, hidden0, prepped)
    probs_seq = jax.block_until_ready(probs_seq)
    hid_seq = jax.block_until_ready(hid_seq)

    # Module-equivalent single-step call.
    probs1, new_hidden1 = skipgram_encoder_forward(tokens[0], hidden0, prepped)
    probs1 = jax.block_until_ready(probs1)
    new_hidden1 = jax.block_until_ready(new_hidden1)

    # Sanity checks against the pure-JAX reference.
    ref_probs, ref_hid = _reference_forward_seq(tokens, hidden0, prepped)
    assert probs_seq.shape == (seq_len, input_size)
    assert hid_seq.shape == (seq_len, 1, hidden_size)
    assert probs1.shape == (1, input_size)
    assert new_hidden1.shape == (1, 1, hidden_size)
    assert jnp.allclose(probs_seq, ref_probs, atol=2e-3)
    assert jnp.allclose(hid_seq, ref_hid, atol=1e-3)
    assert jnp.allclose(probs1, ref_probs[0:1], atol=2e-3)
    assert jnp.allclose(new_hidden1.reshape(1, hidden_size), ref_hid[0], atol=1e-3)
    assert jnp.allclose(jnp.sum(probs_seq, axis=1), 1.0, atol=1e-4)

    print("KERNEL_OK")
</pallas_src>

<mosaic_0001>
module attributes {stable_mosaic.version = 11 : i64} {
  func.func @_skipgram_fused_kernel(%arg0: i32, %arg1: memref<8x128xbf16, #tpu.memory_space<vmem>>, %arg2: memref<1x128xf32, #tpu.memory_space<vmem>>, %arg3: memref<128x384xbf16, #tpu.memory_space<vmem>>, %arg4: memref<128x384xbf16, #tpu.memory_space<vmem>>, %arg5: memref<1x384xf32, #tpu.memory_space<vmem>>, %arg6: memref<1x384xf32, #tpu.memory_space<vmem>>, %arg7: memref<128x128xbf16, #tpu.memory_space<vmem>>, %arg8: memref<1x128xf32, #tpu.memory_space<vmem>>, %arg9: memref<8x128xf32, #tpu.memory_space<vmem>>, %arg10: memref<8x128xf32, #tpu.memory_space<vmem>>, %arg11: memref<8x384xf32, #tpu.memory_space<vmem>>) attributes {dimension_semantics = [#tpu.dimension_semantics<arbitrary>], iteration_bounds = array<i64: 1>, scalar_prefetch = 0 : i64, scratch_operands = 1 : i64, tpu.core_type = #tpu.core_type<tc>, window_params = [{pipeline_mode = #tpu.pipeline_mode<synchronous>, transform_indices = @transform_0, window_bounds = array<i64: 8, 128>}, {pipeline_mode = #tpu.pipeline_mode<synchronous>, transform_indices = @transform_1, window_bounds = array<i64: 1, 128>}, {pipeline_mode = #tpu.pipeline_mode<synchronous>, transform_indices = @transform_2, window_bounds = array<i64: 128, 384>}, {pipeline_mode = #tpu.pipeline_mode<synchronous>, transform_indices = @transform_3, window_bounds = array<i64: 128, 384>}, {pipeline_mode = #tpu.pipeline_mode<synchronous>, transform_indices = @transform_4, window_bounds = array<i64: 1, 384>}, {pipeline_mode = #tpu.pipeline_mode<synchronous>, transform_indices = @transform_5, window_bounds = array<i64: 1, 384>}, {pipeline_mode = #tpu.pipeline_mode<synchronous>, transform_indices = @transform_6, window_bounds = array<i64: 128, 128>}, {pipeline_mode = #tpu.pipeline_mode<synchronous>, transform_indices = @transform_7, window_bounds = array<i64: 1, 128>}, {pipeline_mode = #tpu.pipeline_mode<synchronous>, transform_indices = @transform_8, window_bounds = array<i64: 8, 128>}, {pipeline_mode = #tpu.pipeline_mode<synchronous>, transform_indices = @transform_9, window_bounds = array<i64: 8, 128>}]} {
    %c0 = arith.constant 0 : index
    %c0_0 = arith.constant 0 : index
    %0 = vector.load %arg1[%c0, %c0_0] : memref<8x128xbf16, #tpu.memory_space<vmem>>, vector<8x128xbf16>
    %c0_1 = arith.constant 0 : index
    %c0_2 = arith.constant 0 : index
    %1 = vector.load %arg3[%c0_1, %c0_2] : memref<128x384xbf16, #tpu.memory_space<vmem>>, vector<128x384xbf16>
    %cst = arith.constant dense<0.000000e+00> : vector<8x384xf32>
    %2 = tpu.matmul %0, %1, %cst {dimension_numbers = #tpu.dot_dimension_numbers<[1], [0], [0], [1], [0, 0, 1, 1], [], []>} : vector<8x128xbf16>, vector<128x384xbf16>, vector<8x384xf32> -> vector<8x384xf32>
    %c0_3 = arith.constant 0 : index
    %c0_4 = arith.constant 0 : index
    %3 = vector.load %arg5[%c0_3, %c0_4] : memref<1x384xf32, #tpu.memory_space<vmem>>, vector<1x384xf32>
    %4 = vector.broadcast %3 : vector<1x384xf32> to vector<8x384xf32>
    %5 = arith.addf %2, %4 : vector<8x384xf32>
    %c0_5 = arith.constant 0 : index
    %c0_6 = arith.constant 0 : index
    %6 = vector.load %arg11[%c0_5, %c0_6] : memref<8x384xf32, #tpu.memory_space<vmem>>, vector<8x384xf32>
    tpu.vector_store %arg11[%c0_5, %c0_6], %5 {strides = array<i32>} : memref<8x384xf32, #tpu.memory_space<vmem>>, vector<8x384xf32>,
    %c0_7 = arith.constant 0 : index
    %c0_8 = arith.constant 0 : index
    %7 = vector.load %arg4[%c0_7, %c0_8] : memref<128x384xbf16, #tpu.memory_space<vmem>>, vector<128x384xbf16>
    %c0_9 = arith.constant 0 : index
    %c0_10 = arith.constant 0 : index
    %8 = vector.load %arg6[%c0_9, %c0_10] : memref<1x384xf32, #tpu.memory_space<vmem>>, vector<1x384xf32>
    %c0_11 = arith.constant 0 : index
    %c0_12 = arith.constant 0 : index
    %9 = vector.load %arg2[%c0_11, %c0_12] : memref<1x128xf32, #tpu.memory_space<vmem>>, vector<1x128xf32>
    %10 = arith.truncf %9 : vector<1x128xf32> to vector<1x128xbf16>
    %c0_i32 = arith.constant 0 : i32
    %11 = arith.index_cast %c0_i32 : i32 to index
    %c0_13 = arith.constant 0 : index
    %12 = vector.load %arg11[%11, %c0_13] : memref<8x384xf32, #tpu.memory_space<vmem>>, vector<1x384xf32>
    %cst_14 = arith.constant dense<0.000000e+00> : vector<1x384xf32>
    %13 = tpu.matmul %10, %7, %cst_14 {dimension_numbers = #tpu.dot_dimension_numbers<[1], [0], [0], [1], [0, 0, 1, 1], [], []>} : vector<1x128xbf16>, vector<128x384xbf16>, vector<1x384xf32> -> vector<1x384xf32>
    %14 = arith.addf %13, %8 : vector<1x384xf32>
    %15 = vector.extract_strided_slice %12 {offsets = [0, 0], sizes = [1, 256], strides = [1, 1]} : vector<1x384xf32> to vector<1x256xf32>
    %16 = vector.extract_strided_slice %14 {offsets = [0, 0], sizes = [1, 256], strides = [1, 1]} : vector<1x384xf32> to vector<1x256xf32>
    %17 = arith.addf %15, %16 : vector<1x256xf32>
    %18 = arith.negf %17 : vector<1x256xf32>
    %19 = math.exp %18 : vector<1x256xf32>
    %cst_15 = arith.constant 1.000000e+00 : f32
    %20 = vector.broadcast %cst_15 : f32 to vector<1x256xf32>
    %21 = arith.addf %20, %19 : vector<1x256xf32>
    %22 = arith.divf %20, %21 : vector<1x256xf32>
    %23 = vector.extract_strided_slice %22 {offsets = [0, 0], sizes = [1, 128], strides = [1, 1]} : vector<1x256xf32> to vector<1x128xf32>
    %24 = vector.extract_strided_slice %22 {offsets = [0, 128], sizes = [1, 128], strides = [1, 1]} : vector<1x256xf32> to vector<1x128xf32>
    %25 = vector.extract_strided_slice %12 {offsets = [0, 256], sizes = [1, 128], strides = [1, 1]} : vector<1x384xf32> to vector<1x128xf32>
    %26 = vector.extract_strided_slice %14 {offsets = [0, 256], sizes = [1, 128], strides = [1, 1]} : vector<1x384xf32> to vector<1x128xf32>
    %27 = arith.mulf %23, %26 : vector<1x128xf32>
    %28 = arith.addf %25, %27 : vector<1x128xf32>
    %29 = math.tanh %28 : vector<1x128xf32>
    %cst_16 = arith.constant 1.000000e+00 : f32
    %30 = vector.broadcast %cst_16 : f32 to vector<1x128xf32>
    %31 = arith.subf %30, %24 : vector<1x128xf32>
    %32 = arith.mulf %31, %29 : vector<1x128xf32>
    %33 = arith.mulf %24, %9 : vector<1x128xf32>
    %34 = arith.addf %32, %33 : vector<1x128xf32>
    %35 = arith.mulf %34, %34 : vector<1x128xf32>
    %36 = vector.shape_cast %35 : vector<1x128xf32> to vector<1x1x128xf32>
    %cst_17 = arith.constant dense<0.000000e+00> : vector<1xf32>
    %37 = vector.multi_reduction <add>, %36, %cst_17 [1, 2] : vector<1x1x128xf32> to vector<1xf32>
    %38 = vector.shape_cast %37 : vector<1xf32> to vector<1x1x1xf32>
    %39 = vector.extract %38[0, 0, 0] : f32 from vector<1x1x1xf32>
    %40 = vector.broadcast %39 : f32 to vector<1x1xf32>
    %cst_18 = arith.constant 1.000000e-30 : f32
    %41 = vector.broadcast %cst_18 : f32 to vector<1x1xf32>
    %42 = arith.addf %40, %41 : vector<1x1xf32>
    %43 = math.rsqrt %42 : vector<1x1xf32>
    %44 = vector.broadcast %43 : vector<1x1xf32> to vector<1x128xf32>
    %45 = arith.mulf %34, %44 : vector<1x128xf32>
    %46 = arith.index_cast %c0_i32 : i32 to index
    %c0_19 = arith.constant 0 : index
    %47 = vector.load %arg10[%46, %c0_19] : memref<8x128xf32, #tpu.memory_space<vmem>>, vector<1x128xf32>
    tpu.vector_store %arg10[%46, %c0_19], %45 {strides = array<i32>} : memref<8x128xf32, #tpu.memory_space<vmem>>, vector<1x128xf32>,
    %48 = arith.truncf %45 : vector<1x128xf32> to vector<1x128xbf16>
    %c1_i32 = arith.constant 1 : i32
    %49 = arith.index_cast %c1_i32 : i32 to index
    %c0_20 = arith.constant 0 : index
    %50 = vector.load %arg11[%49, %c0_20] : memref<8x384xf32, #tpu.memory_space<vmem>>, vector<1x384xf32>
    %cst_21 = arith.constant dense<0.000000e+00> : vector<1x384xf32>
    %51 = tpu.matmul %48, %7, %cst_21 {dimension_numbers = #tpu.dot_dimension_numbers<[1], [0], [0], [1], [0, 0, 1, 1], [], []>} : vector<1x128xbf16>, vector<128x384xbf16>, vector<1x384xf32> -> vector<1x384xf32>
    %52 = arith.addf %51, %8 : vector<1x384xf32>
    %53 = vector.extract_strided_slice %50 {offsets = [0, 0], sizes = [1, 256], strides = [1, 1]} : vector<1x384xf32> to vector<1x256xf32>
    %54 = vector.extract_strided_slice %52 {offsets = [0, 0], sizes = [1, 256], strides = [1, 1]} : vector<1x384xf32> to vector<1x256xf32>
    %55 = arith.addf %53, %54 : vector<1x256xf32>
    %56 = arith.negf %55 : vector<1x256xf32>
    %57 = math.exp %56 : vector<1x256xf32>
    %cst_22 = arith.constant 1.000000e+00 : f32
    %58 = vector.broadcast %cst_22 : f32 to vector<1x256xf32>
    %59 = arith.addf %58, %57 : vector<1x256xf32>
    %60 = arith.divf %58, %59 : vector<1x256xf32>
    %61 = vector.extract_strided_slice %60 {offsets = [0, 0], sizes = [1, 128], strides = [1, 1]} : vector<1x256xf32> to vector<1x128xf32>
    %62 = vector.extract_strided_slice %60 {offsets = [0, 128], sizes = [1, 128], strides = [1, 1]} : vector<1x256xf32> to vector<1x128xf32>
    %63 = vector.extract_strided_slice %50 {offsets = [0, 256], sizes = [1, 128], strides = [1, 1]} : vector<1x384xf32> to vector<1x128xf32>
    %64 = vector.extract_strided_slice %52 {offsets = [0, 256], sizes = [1, 128], strides = [1, 1]} : vector<1x384xf32> to vector<1x128xf32>
    %65 = arith.mulf %61, %64 : vector<1x128xf32>
    %66 = arith.addf %63, %65 : vector<1x128xf32>
    %67 = math.tanh %66 : vector<1x128xf32>
    %cst_23 = arith.constant 1.000000e+00 : f32
    %68 = vector.broadcast %cst_23 : f32 to vector<1x128xf32>
    %69 = arith.subf %68, %62 : vector<1x128xf32>
    %70 = arith.mulf %69, %67 : vector<1x128xf32>
    %71 = arith.mulf %62, %45 : vector<1x128xf32>
    %72 = arith.addf %70, %71 : vector<1x128xf32>
    %73 = arith.mulf %72, %72 : vector<1x128xf32>
    %74 = vector.shape_cast %73 : vector<1x128xf32> to vector<1x1x128xf32>
    %cst_24 = arith.constant dense<0.000000e+00> : vector<1xf32>
    %75 = vector.multi_reduction <add>, %74, %cst_24 [1, 2] : vector<1x1x128xf32> to vector<1xf32>
    %76 = vector.shape_cast %75 : vector<1xf32> to vector<1x1x1xf32>
    %77 = vector.extract %76[0, 0, 0] : f32 from vector<1x1x1xf32>
    %78 = vector.broadcast %77 : f32 to vector<1x1xf32>
    %cst_25 = arith.constant 1.000000e-30 : f32
    %79 = vector.broadcast %cst_25 : f32 to vector<1x1xf32>
    %80 = arith.addf %78, %79 : vector<1x1xf32>
    %81 = math.rsqrt %80 : vector<1x1xf32>
    %82 = vector.broadcast %81 : vector<1x1xf32> to vector<1x128xf32>
    %83 = arith.mulf %72, %82 : vector<1x128xf32>
    %84 = arith.index_cast %c1_i32 : i32 to index
    %c0_26 = arith.constant 0 : index
    %85 = vector.load %arg10[%84, %c0_26] : memref<8x128xf32, #tpu.memory_space<vmem>>, vector<1x128xf32>
    tpu.vector_store %arg10[%84, %c0_26], %83 {strides = array<i32>} : memref<8x128xf32, #tpu.memory_space<vmem>>, vector<1x128xf32>,
    %86 = arith.truncf %83 : vector<1x128xf32> to vector<1x128xbf16>
    %c2_i32 = arith.constant 2 : i32
    %87 = arith.index_cast %c2_i32 : i32 to index
    %c0_27 = arith.constant 0 : index
    %88 = vector.load %arg11[%87, %c0_27] : memref<8x384xf32, #tpu.memory_space<vmem>>, vector<1x384xf32>
    %cst_28 = arith.constant dense<0.000000e+00> : vector<1x384xf32>
    %89 = tpu.matmul %86, %7, %cst_28 {dimension_numbers = #tpu.dot_dimension_numbers<[1], [0], [0], [1], [0, 0, 1, 1], [], []>} : vector<1x128xbf16>, vector<128x384xbf16>, vector<1x384xf32> -> vector<1x384xf32>
    %90 = arith.addf %89, %8 : vector<1x384xf32>
    %91 = vector.extract_strided_slice %88 {offsets = [0, 0], sizes = [1, 256], strides = [1, 1]} : vector<1x384xf32> to vector<1x256xf32>
    %92 = vector.extract_strided_slice %90 {offsets = [0, 0], sizes = [1, 256], strides = [1, 1]} : vector<1x384xf32> to vector<1x256xf32>
    %93 = arith.addf %91, %92 : vector<1x256xf32>
    %94 = arith.negf %93 : vector<1x256xf32>
    %95 = math.exp %94 : vector<1x256xf32>
    %cst_29 = arith.constant 1.000000e+00 : f32
    %96 = vector.broadcast %cst_29 : f32 to vector<1x256xf32>
    %97 = arith.addf %96, %95 : vector<1x256xf32>
    %98 = arith.divf %96, %97 : vector<1x256xf32>
    %99 = vector.extract_strided_slice %98 {offsets = [0, 0], sizes = [1, 128], strides = [1, 1]} : vector<1x256xf32> to vector<1x128xf32>
    %100 = vector.extract_strided_slice %98 {offsets = [0, 128], sizes = [1, 128], strides = [1, 1]} : vector<1x256xf32> to vector<1x128xf32>
    %101 = vector.extract_strided_slice %88 {offsets = [0, 256], sizes = [1, 128], strides = [1, 1]} : vector<1x384xf32> to vector<1x128xf32>
    %102 = vector.extract_strided_slice %90 {offsets = [0, 256], sizes = [1, 128], strides = [1, 1]} : vector<1x384xf32> to vector<1x128xf32>
    %103 = arith.mulf %99, %102 : vector<1x128xf32>
    %104 = arith.addf %101, %103 : vector<1x128xf32>
    %105 = math.tanh %104 : vector<1x128xf32>
    %cst_30 = arith.constant 1.000000e+00 : f32
    %106 = vector.broadcast %cst_30 : f32 to vector<1x128xf32>
    %107 = arith.subf %106, %100 : vector<1x128xf32>
    %108 = arith.mulf %107, %105 : vector<1x128xf32>
    %109 = arith.mulf %100, %83 : vector<1x128xf32>
    %110 = arith.addf %108, %109 : vector<1x128xf32>
    %111 = arith.mulf %110, %110 : vector<1x128xf32>
    %112 = vector.shape_cast %111 : vector<1x128xf32> to vector<1x1x128xf32>
    %cst_31 = arith.constant dense<0.000000e+00> : vector<1xf32>
    %113 = vector.multi_reduction <add>, %112, %cst_31 [1, 2] : vector<1x1x128xf32> to vector<1xf32>
    %114 = vector.shape_cast %113 : vector<1xf32> to vector<1x1x1xf32>
    %115 = vector.extract %114[0, 0, 0] : f32 from vector<1x1x1xf32>
    %116 = vector.broadcast %115 : f32 to vector<1x1xf32>
    %cst_32 = arith.constant 1.000000e-30 : f32
    %117 = vector.broadcast %cst_32 : f32 to vector<1x1xf32>
    %118 = arith.addf %116, %117 : vector<1x1xf32>
    %119 = math.rsqrt %118 : vector<1x1xf32>
    %120 = vector.broadcast %119 : vector<1x1xf32> to vector<1x128xf32>
    %121 = arith.mulf %110, %120 : vector<1x128xf32>
    %122 = arith.index_cast %c2_i32 : i32 to index
    %c0_33 = arith.constant 0 : index
    %123 = vector.load %arg10[%122, %c0_33] : memref<8x128xf32, #tpu.memory_space<vmem>>, vector<1x128xf32>
    tpu.vector_store %arg10[%122, %c0_33], %121 {strides = array<i32>} : memref<8x128xf32, #tpu.memory_space<vmem>>, vector<1x128xf32>,
    %124 = arith.truncf %121 : vector<1x128xf32> to vector<1x128xbf16>
    %c3_i32 = arith.constant 3 : i32
    %125 = arith.index_cast %c3_i32 : i32 to index
    %c0_34 = arith.constant 0 : index
    %126 = vector.load %arg11[%125, %c0_34] : memref<8x384xf32, #tpu.memory_space<vmem>>, vector<1x384xf32>
    %cst_35 = arith.constant dense<0.000000e+00> : vector<1x384xf32>
    %127 = tpu.matmul %124, %7, %cst_35 {dimension_numbers = #tpu.dot_dimension_numbers<[1], [0], [0], [1], [0, 0, 1, 1], [], []>} : vector<1x128xbf16>, vector<128x384xbf16>, vector<1x384xf32> -> vector<1x384xf32>
    %128 = arith.addf %127, %8 : vector<1x384xf32>
    %129 = vector.extract_strided_slice %126 {offsets = [0, 0], sizes = [1, 256], strides = [1, 1]} : vector<1x384xf32> to vector<1x256xf32>
    %130 = vector.extract_strided_slice %128 {offsets = [0, 0], sizes = [1, 256], strides = [1, 1]} : vector<1x384xf32> to vector<1x256xf32>
    %131 = arith.addf %129, %130 : vector<1x256xf32>
    %132 = arith.negf %131 : vector<1x256xf32>
    %133 = math.exp %132 : vector<1x256xf32>
    %cst_36 = arith.constant 1.000000e+00 : f32
    %134 = vector.broadcast %cst_36 : f32 to vector<1x256xf32>
    %135 = arith.addf %134, %133 : vector<1x256xf32>
    %136 = arith.divf %134, %135 : vector<1x256xf32>
    %137 = vector.extract_strided_slice %136 {offsets = [0, 0], sizes = [1, 128], strides = [1, 1]} : vector<1x256xf32> to vector<1x128xf32>
    %138 = vector.extract_strided_slice %136 {offsets = [0, 128], sizes = [1, 128], strides = [1, 1]} : vector<1x256xf32> to vector<1x128xf32>
    %139 = vector.extract_strided_slice %126 {offsets = [0, 256], sizes = [1, 128], strides = [1, 1]} : vector<1x384xf32> to vector<1x128xf32>
    %140 = vector.extract_strided_slice %128 {offsets = [0, 256], sizes = [1, 128], strides = [1, 1]} : vector<1x384xf32> to vector<1x128xf32>
    %141 = arith.mulf %137, %140 : vector<1x128xf32>
    %142 = arith.addf %139, %141 : vector<1x128xf32>
    %143 = math.tanh %142 : vector<1x128xf32>
    %cst_37 = arith.constant 1.000000e+00 : f32
    %144 = vector.broadcast %cst_37 : f32 to vector<1x128xf32>
    %145 = arith.subf %144, %138 : vector<1x128xf32>
    %146 = arith.mulf %145, %143 : vector<1x128xf32>
    %147 = arith.mulf %138, %121 : vector<1x128xf32>
    %148 = arith.addf %146, %147 : vector<1x128xf32>
    %149 = arith.mulf %148, %148 : vector<1x128xf32>
    %150 = vector.shape_cast %149 : vector<1x128xf32> to vector<1x1x128xf32>
    %cst_38 = arith.constant dense<0.000000e+00> : vector<1xf32>
    %151 = vector.multi_reduction <add>, %150, %cst_38 [1, 2] : vector<1x1x128xf32> to vector<1xf32>
    %152 = vector.shape_cast %151 : vector<1xf32> to vector<1x1x1xf32>
    %153 = vector.extract %152[0, 0, 0] : f32 from vector<1x1x1xf32>
    %154 = vector.broadcast %153 : f32 to vector<1x1xf32>
    %cst_39 = arith.constant 1.000000e-30 : f32
    %155 = vector.broadcast %cst_39 : f32 to vector<1x1xf32>
    %156 = arith.addf %154, %155 : vector<1x1xf32>
    %157 = math.rsqrt %156 : vector<1x1xf32>
    %158 = vector.broadcast %157 : vector<1x1xf32> to vector<1x128xf32>
    %159 = arith.mulf %148, %158 : vector<1x128xf32>
    %160 = arith.index_cast %c3_i32 : i32 to index
    %c0_40 = arith.constant 0 : index
    %161 = vector.load %arg10[%160, %c0_40] : memref<8x128xf32, #tpu.memory_space<vmem>>, vector<1x128xf32>
    tpu.vector_store %arg10[%160, %c0_40], %159 {strides = array<i32>} : memref<8x128xf32, #tpu.memory_space<vmem>>, vector<1x128xf32>,
    %162 = arith.truncf %159 : vector<1x128xf32> to vector<1x128xbf16>
    %c4_i32 = arith.constant 4 : i32
    %163 = arith.index_cast %c4_i32 : i32 to index
    %c0_41 = arith.constant 0 : index
    %164 = vector.load %arg11[%163, %c0_41] : memref<8x384xf32, #tpu.memory_space<vmem>>, vector<1x384xf32>
    %cst_42 = arith.constant dense<0.000000e+00> : vector<1x384xf32>
    %165 = tpu.matmul %162, %7, %cst_42 {dimension_numbers = #tpu.dot_dimension_numbers<[1], [0], [0], [1], [0, 0, 1, 1], [], []>} : vector<1x128xbf16>, vector<128x384xbf16>, vector<1x384xf32> -> vector<1x384xf32>
    %166 = arith.addf %165, %8 : vector<1x384xf32>
    %167 = vector.extract_strided_slice %164 {offsets = [0, 0], sizes = [1, 256], strides = [1, 1]} : vector<1x384xf32> to vector<1x256xf32>
    %168 = vector.extract_strided_slice %166 {offsets = [0, 0], sizes = [1, 256], strides = [1, 1]} : vector<1x384xf32> to vector<1x256xf32>
    %169 = arith.addf %167, %168 : vector<1x256xf32>
    %170 = arith.negf %169 : vector<1x256xf32>
    %171 = math.exp %170 : vector<1x256xf32>
    %cst_43 = arith.constant 1.000000e+00 : f32
    %172 = vector.broadcast %cst_43 : f32 to vector<1x256xf32>
    %173 = arith.addf %172, %171 : vector<1x256xf32>
    %174 = arith.divf %172, %173 : vector<1x256xf32>
    %175 = vector.extract_strided_slice %174 {offsets = [0, 0], sizes = [1, 128], strides = [1, 1]} : vector<1x256xf32> to vector<1x128xf32>
    %176 = vector.extract_strided_slice %174 {offsets = [0, 128], sizes = [1, 128], strides = [1, 1]} : vector<1x256xf32> to vector<1x128xf32>
    %177 = vector.extract_strided_slice %164 {offsets = [0, 256], sizes = [1, 128], strides = [1, 1]} : vector<1x384xf32> to vector<1x128xf32>
    %178 = vector.extract_strided_slice %166 {offsets = [0, 256], sizes = [1, 128], strides = [1, 1]} : vector<1x384xf32> to vector<1x128xf32>
    %179 = arith.mulf %175, %178 : vector<1x128xf32>
    %180 = arith.addf %177, %179 : vector<1x128xf32>
    %181 = math.tanh %180 : vector<1x128xf32>
    %cst_44 = arith.constant 1.000000e+00 : f32
    %182 = vector.broadcast %cst_44 : f32 to vector<1x128xf32>
    %183 = arith.subf %182, %176 : vector<1x128xf32>
    %184 = arith.mulf %183, %181 : vector<1x128xf32>
    %185 = arith.mulf %176, %159 : vector<1x128xf32>
    %186 = arith.addf %184, %185 : vector<1x128xf32>
    %187 = arith.mulf %186, %186 : vector<1x128xf32>
    %188 = vector.shape_cast %187 : vector<1x128xf32> to vector<1x1x128xf32>
    %cst_45 = arith.constant dense<0.000000e+00> : vector<1xf32>
    %189 = vector.multi_reduction <add>, %188, %cst_45 [1, 2] : vector<1x1x128xf32> to vector<1xf32>
    %190 = vector.shape_cast %189 : vector<1xf32> to vector<1x1x1xf32>
    %191 = vector.extract %190[0, 0, 0] : f32 from vector<1x1x1xf32>
    %192 = vector.broadcast %191 : f32 to vector<1x1xf32>
    %cst_46 = arith.constant 1.000000e-30 : f32
    %193 = vector.broadcast %cst_46 : f32 to vector<1x1xf32>
    %194 = arith.addf %192, %193 : vector<1x1xf32>
    %195 = math.rsqrt %194 : vector<1x1xf32>
    %196 = vector.broadcast %195 : vector<1x1xf32> to vector<1x128xf32>
    %197 = arith.mulf %186, %196 : vector<1x128xf32>
    %198 = arith.index_cast %c4_i32 : i32 to index
    %c0_47 = arith.constant 0 : index
    %199 = vector.load %arg10[%198, %c0_47] : memref<8x128xf32, #tpu.memory_space<vmem>>, vector<1x128xf32>
    tpu.vector_store %arg10[%198, %c0_47], %197 {strides = array<i32>} : memref<8x128xf32, #tpu.memory_space<vmem>>, vector<1x128xf32>,
    %200 = arith.truncf %197 : vector<1x128xf32> to vector<1x128xbf16>
    %c5_i32 = arith.constant 5 : i32
    %201 = arith.index_cast %c5_i32 : i32 to index
    %c0_48 = arith.constant 0 : index
    %202 = vector.load %arg11[%201, %c0_48] : memref<8x384xf32, #tpu.memory_space<vmem>>, vector<1x384xf32>
    %cst_49 = arith.constant dense<0.000000e+00> : vector<1x384xf32>
    %203 = tpu.matmul %200, %7, %cst_49 {dimension_numbers = #tpu.dot_dimension_numbers<[1], [0], [0], [1], [0, 0, 1, 1], [], []>} : vector<1x128xbf16>, vector<128x384xbf16>, vector<1x384xf32> -> vector<1x384xf32>
    %204 = arith.addf %203, %8 : vector<1x384xf32>
    %205 = vector.extract_strided_slice %202 {offsets = [0, 0], sizes = [1, 256], strides = [1, 1]} : vector<1x384xf32> to vector<1x256xf32>
    %206 = vector.extract_strided_slice %204 {offsets = [0, 0], sizes = [1, 256], strides = [1, 1]} : vector<1x384xf32> to vector<1x256xf32>
    %207 = arith.addf %205, %206 : vector<1x256xf32>
    %208 = arith.negf %207 : vector<1x256xf32>
    %209 = math.exp %208 : vector<1x256xf32>
    %cst_50 = arith.constant 1.000000e+00 : f32
    %210 = vector.broadcast %cst_50 : f32 to vector<1x256xf32>
    %211 = arith.addf %210, %209 : vector<1x256xf32>
    %212 = arith.divf %210, %211 : vector<1x256xf32>
    %213 = vector.extract_strided_slice %212 {offsets = [0, 0], sizes = [1, 128], strides = [1, 1]} : vector<1x256xf32> to vector<1x128xf32>
    %214 = vector.extract_strided_slice %212 {offsets = [0, 128], sizes = [1, 128], strides = [1, 1]} : vector<1x256xf32> to vector<1x128xf32>
    %215 = vector.extract_strided_slice %202 {offsets = [0, 256], sizes = [1, 128], strides = [1, 1]} : vector<1x384xf32> to vector<1x128xf32>
    %216 = vector.extract_strided_slice %204 {offsets = [0, 256], sizes = [1, 128], strides = [1, 1]} : vector<1x384xf32> to vector<1x128xf32>
    %217 = arith.mulf %213, %216 : vector<1x128xf32>
    %218 = arith.addf %215, %217 : vector<1x128xf32>
    %219 = math.tanh %218 : vector<1x128xf32>
    %cst_51 = arith.constant 1.000000e+00 : f32
    %220 = vector.broadcast %cst_51 : f32 to vector<1x128xf32>
    %221 = arith.subf %220, %214 : vector<1x128xf32>
    %222 = arith.mulf %221, %219 : vector<1x128xf32>
    %223 = arith.mulf %214, %197 : vector<1x128xf32>
    %224 = arith.addf %222, %223 : vector<1x128xf32>
    %225 = arith.mulf %224, %224 : vector<1x128xf32>
    %226 = vector.shape_cast %225 : vector<1x128xf32> to vector<1x1x128xf32>
    %cst_52 = arith.constant dense<0.000000e+00> : vector<1xf32>
    %227 = vector.multi_reduction <add>, %226, %cst_52 [1, 2] : vector<1x1x128xf32> to vector<1xf32>
    %228 = vector.shape_cast %227 : vector<1xf32> to vector<1x1x1xf32>
    %229 = vector.extract %228[0, 0, 0] : f32 from vector<1x1x1xf32>
    %230 = vector.broadcast %229 : f32 to vector<1x1xf32>
    %cst_53 = arith.constant 1.000000e-30 : f32
    %231 = vector.broadcast %cst_53 : f32 to vector<1x1xf32>
    %232 = arith.addf %230, %231 : vector<1x1xf32>
    %233 = math.rsqrt %232 : vector<1x1xf32>
    %234 = vector.broadcast %233 : vector<1x1xf32> to vector<1x128xf32>
    %235 = arith.mulf %224, %234 : vector<1x128xf32>
    %236 = arith.index_cast %c5_i32 : i32 to index
    %c0_54 = arith.constant 0 : index
    %237 = vector.load %arg10[%236, %c0_54] : memref<8x128xf32, #tpu.memory_space<vmem>>, vector<1x128xf32>
    tpu.vector_store %arg10[%236, %c0_54], %235 {strides = array<i32>} : memref<8x128xf32, #tpu.memory_space<vmem>>, vector<1x128xf32>,
    %238 = arith.truncf %235 : vector<1x128xf32> to vector<1x128xbf16>
    %c6_i32 = arith.constant 6 : i32
    %239 = arith.index_cast %c6_i32 : i32 to index
    %c0_55 = arith.constant 0 : index
    %240 = vector.load %arg11[%239, %c0_55] : memref<8x384xf32, #tpu.memory_space<vmem>>, vector<1x384xf32>
    %cst_56 = arith.constant dense<0.000000e+00> : vector<1x384xf32>
    %241 = tpu.matmul %238, %7, %cst_56 {dimension_numbers = #tpu.dot_dimension_numbers<[1], [0], [0], [1], [0, 0, 1, 1], [], []>} : vector<1x128xbf16>, vector<128x384xbf16>, vector<1x384xf32> -> vector<1x384xf32>
    %242 = arith.addf %241, %8 : vector<1x384xf32>
    %243 = vector.extract_strided_slice %240 {offsets = [0, 0], sizes = [1, 256], strides = [1, 1]} : vector<1x384xf32> to vector<1x256xf32>
    %244 = vector.extract_strided_slice %242 {offsets = [0, 0], sizes = [1, 256], strides = [1, 1]} : vector<1x384xf32> to vector<1x256xf32>
    %245 = arith.addf %243, %244 : vector<1x256xf32>
    %246 = arith.negf %245 : vector<1x256xf32>
    %247 = math.exp %246 : vector<1x256xf32>
    %cst_57 = arith.constant 1.000000e+00 : f32
    %248 = vector.broadcast %cst_57 : f32 to vector<1x256xf32>
    %249 = arith.addf %248, %247 : vector<1x256xf32>
    %250 = arith.divf %248, %249 : vector<1x256xf32>
    %251 = vector.extract_strided_slice %250 {offsets = [0, 0], sizes = [1, 128], strides = [1, 1]} : vector<1x256xf32> to vector<1x128xf32>
    %252 = vector.extract_strided_slice %250 {offsets = [0, 128], sizes = [1, 128], strides = [1, 1]} : vector<1x256xf32> to vector<1x128xf32>
    %253 = vector.extract_strided_slice %240 {offsets = [0, 256], sizes = [1, 128], strides = [1, 1]} : vector<1x384xf32> to vector<1x128xf32>
    %254 = vector.extract_strided_slice %242 {offsets = [0, 256], sizes = [1, 128], strides = [1, 1]} : vector<1x384xf32> to vector<1x128xf32>
    %255 = arith.mulf %251, %254 : vector<1x128xf32>
    %256 = arith.addf %253, %255 : vector<1x128xf32>
    %257 = math.tanh %256 : vector<1x128xf32>
    %cst_58 = arith.constant 1.000000e+00 : f32
    %258 = vector.broadcast %cst_58 : f32 to vector<1x128xf32>
    %259 = arith.subf %258, %252 : vector<1x128xf32>
    %260 = arith.mulf %259, %257 : vector<1x128xf32>
    %261 = arith.mulf %252, %235 : vector<1x128xf32>
    %262 = arith.addf %260, %261 : vector<1x128xf32>
    %263 = arith.mulf %262, %262 : vector<1x128xf32>
    %264 = vector.shape_cast %263 : vector<1x128xf32> to vector<1x1x128xf32>
    %cst_59 = arith.constant dense<0.000000e+00> : vector<1xf32>
    %265 = vector.multi_reduction <add>, %264, %cst_59 [1, 2] : vector<1x1x128xf32> to vector<1xf32>
    %266 = vector.shape_cast %265 : vector<1xf32> to vector<1x1x1xf32>
    %267 = vector.extract %266[0, 0, 0] : f32 from vector<1x1x1xf32>
    %268 = vector.broadcast %267 : f32 to vector<1x1xf32>
    %cst_60 = arith.constant 1.000000e-30 : f32
    %269 = vector.broadcast %cst_60 : f32 to vector<1x1xf32>
    %270 = arith.addf %268, %269 : vector<1x1xf32>
    %271 = math.rsqrt %270 : vector<1x1xf32>
    %272 = vector.broadcast %271 : vector<1x1xf32> to vector<1x128xf32>
    %273 = arith.mulf %262, %272 : vector<1x128xf32>
    %274 = arith.index_cast %c6_i32 : i32 to index
    %c0_61 = arith.constant 0 : index
    %275 = vector.load %arg10[%274, %c0_61] : memref<8x128xf32, #tpu.memory_space<vmem>>, vector<1x128xf32>
    tpu.vector_store %arg10[%274, %c0_61], %273 {strides = array<i32>} : memref<8x128xf32, #tpu.memory_space<vmem>>, vector<1x128xf32>,
    %276 = arith.truncf %273 : vector<1x128xf32> to vector<1x128xbf16>
    %c7_i32 = arith.constant 7 : i32
    %277 = arith.index_cast %c7_i32 : i32 to index
    %c0_62 = arith.constant 0 : index
    %278 = vector.load %arg11[%277, %c0_62] : memref<8x384xf32, #tpu.memory_space<vmem>>, vector<1x384xf32>
    %cst_63 = arith.constant dense<0.000000e+00> : vector<1x384xf32>
    %279 = tpu.matmul %276, %7, %cst_63 {dimension_numbers = #tpu.dot_dimension_numbers<[1], [0], [0], [1], [0, 0, 1, 1], [], []>} : vector<1x128xbf16>, vector<128x384xbf16>, vector<1x384xf32> -> vector<1x384xf32>
    %280 = arith.addf %279, %8 : vector<1x384xf32>
    %281 = vector.extract_strided_slice %278 {offsets = [0, 0], sizes = [1, 256], strides = [1, 1]} : vector<1x384xf32> to vector<1x256xf32>
    %282 = vector.extract_strided_slice %280 {offsets = [0, 0], sizes = [1, 256], strides = [1, 1]} : vector<1x384xf32> to vector<1x256xf32>
    %283 = arith.addf %281, %282 : vector<1x256xf32>
    %284 = arith.negf %283 : vector<1x256xf32>
    %285 = math.exp %284 : vector<1x256xf32>
    %cst_64 = arith.constant 1.000000e+00 : f32
    %286 = vector.broadcast %cst_64 : f32 to vector<1x256xf32>
    %287 = arith.addf %286, %285 : vector<1x256xf32>
    %288 = arith.divf %286, %287 : vector<1x256xf32>
    %289 = vector.extract_strided_slice %288 {offsets = [0, 0], sizes = [1, 128], strides = [1, 1]} : vector<1x256xf32> to vector<1x128xf32>
    %290 = vector.extract_strided_slice %288 {offsets = [0, 128], sizes = [1, 128], strides = [1, 1]} : vector<1x256xf32> to vector<1x128xf32>
    %291 = vector.extract_strided_slice %278 {offsets = [0, 256], sizes = [1, 128], strides = [1, 1]} : vector<1x384xf32> to vector<1x128xf32>
    %292 = vector.extract_strided_slice %280 {offsets = [0, 256], sizes = [1, 128], strides = [1, 1]} : vector<1x384xf32> to vector<1x128xf32>
    %293 = arith.mulf %289, %292 : vector<1x128xf32>
    %294 = arith.addf %291, %293 : vector<1x128xf32>
    %295 = math.tanh %294 : vector<1x128xf32>
    %cst_65 = arith.constant 1.000000e+00 : f32
    %296 = vector.broadcast %cst_65 : f32 to vector<1x128xf32>
    %297 = arith.subf %296, %290 : vector<1x128xf32>
    %298 = arith.mulf %297, %295 : vector<1x128xf32>
    %299 = arith.mulf %290, %273 : vector<1x128xf32>
    %300 = arith.addf %298, %299 : vector<1x128xf32>
    %301 = arith.mulf %300, %300 : vector<1x128xf32>
    %302 = vector.shape_cast %301 : vector<1x128xf32> to vector<1x1x128xf32>
    %cst_66 = arith.constant dense<0.000000e+00> : vector<1xf32>
    %303 = vector.multi_reduction <add>, %302, %cst_66 [1, 2] : vector<1x1x128xf32> to vector<1xf32>
    %304 = vector.shape_cast %303 : vector<1xf32> to vector<1x1x1xf32>
    %305 = vector.extract %304[0, 0, 0] : f32 from vector<1x1x1xf32>
    %306 = vector.broadcast %305 : f32 to vector<1x1xf32>
    %cst_67 = arith.constant 1.000000e-30 : f32
    %307 = vector.broadcast %cst_67 : f32 to vector<1x1xf32>
    %308 = arith.addf %306, %307 : vector<1x1xf32>
    %309 = math.rsqrt %308 : vector<1x1xf32>
    %310 = vector.broadcast %309 : vector<1x1xf32> to vector<1x128xf32>
    %311 = arith.mulf %300, %310 : vector<1x128xf32>
    %312 = arith.index_cast %c7_i32 : i32 to index
    %c0_68 = arith.constant 0 : index
    %313 = vector.load %arg10[%312, %c0_68] : memref<8x128xf32, #tpu.memory_space<vmem>>, vector<1x128xf32>
    tpu.vector_store %arg10[%312, %c0_68], %311 {strides = array<i32>} : memref<8x128xf32, #tpu.memory_space<vmem>>, vector<1x128xf32>,
    %314 = arith.truncf %311 : vector<1x128xf32> to vector<1x128xbf16>
    %c8_i32 = arith.constant 8 : i32
    %c0_69 = arith.constant 0 : index
    %c0_70 = arith.constant 0 : index
    %315 = vector.load %arg10[%c0_69, %c0_70] : memref<8x128xf32, #tpu.memory_space<vmem>>, vector<8x128xf32>
    %316 = arith.truncf %315 : vector<8x128xf32> to vector<8x128xbf16>
    %c0_71 = arith.constant 0 : index
    %c0_72 = arith.constant 0 : index
    %317 = vector.load %arg7[%c0_71, %c0_72] : memref<128x128xbf16, #tpu.memory_space<vmem>>, vector<128x128xbf16>
    %cst_73 = arith.constant dense<0.000000e+00> : vector<8x128xf32>
    %318 = tpu.matmul %316, %317, %cst_73 {dimension_numbers = #tpu.dot_dimension_numbers<[1], [0], [0], [1], [0, 0, 1, 1], [], []>} : vector<8x128xbf16>, vector<128x128xbf16>, vector<8x128xf32> -> vector<8x128xf32>
    %c0_74 = arith.constant 0 : index
    %c0_75 = arith.constant 0 : index
    %319 = vector.load %arg8[%c0_74, %c0_75] : memref<1x128xf32, #tpu.memory_space<vmem>>, vector<1x128xf32>
    %320 = vector.broadcast %319 : vector<1x128xf32> to vector<8x128xf32>
    %321 = arith.addf %318, %320 : vector<8x128xf32>
    %cst_76 = arith.constant dense<0xFF800000> : vector<8xf32>
    %322 = vector.multi_reduction <maximumf>, %321, %cst_76 [1] : vector<8x128xf32> to vector<8xf32>
    %323 = vector.shape_cast %322 : vector<8xf32> to vector<8x1xf32>
    %324 = vector.broadcast %323 : vector<8x1xf32> to vector<8x128xf32>
    %325 = arith.subf %321, %324 : vector<8x128xf32>
    %326 = math.exp %325 : vector<8x128xf32>
    %cst_77 = arith.constant dense<0.000000e+00> : vector<8xf32>
    %327 = vector.multi_reduction <add>, %326, %cst_77 [1] : vector<8x128xf32> to vector<8xf32>
    %328 = vector.shape_cast %327 : vector<8xf32> to vector<8x1xf32>
    %329 = tpu.reciprocal %328 : vector<8x1xf32> -> vector<8x1xf32>
    %330 = vector.broadcast %329 : vector<8x1xf32> to vector<8x128xf32>
    %331 = arith.mulf %326, %330 : vector<8x128xf32>
    %c0_78 = arith.constant 0 : index
    %c0_79 = arith.constant 0 : index
    %332 = vector.load %arg9[%c0_78, %c0_79] : memref<8x128xf32, #tpu.memory_space<vmem>>, vector<8x128xf32>
    tpu.vector_store %arg9[%c0_78, %c0_79], %331 {strides = array<i32>} : memref<8x128xf32, #tpu.memory_space<vmem>>, vector<8x128xf32>,
    return
  }
  func.func @transform_0(%arg0: i32) -> (i32, i32) {
    %c0_i32 = arith.constant 0 : i32
    %c0_i32_0 = arith.constant 0 : i32
    %c0_i32_1 = arith.constant 0 : i32
    return %c0_i32, %c0_i32_0 : i32, i32
  }
  func.func @transform_1(%arg0: i32) -> (i32, i32) {
    %c0_i32 = arith.constant 0 : i32
    %c0_i32_0 = arith.constant 0 : i32
    %c0_i32_1 = arith.constant 0 : i32
    return %c0_i32, %c0_i32_0 : i32, i32
  }
  func.func @transform_2(%arg0: i32) -> (i32, i32) {
    %c0_i32 = arith.constant 0 : i32
    %c0_i32_0 = arith.constant 0 : i32
    %c0_i32_1 = arith.constant 0 : i32
    return %c0_i32, %c0_i32_0 : i32, i32
  }
  func.func @transform_3(%arg0: i32) -> (i32, i32) {
    %c0_i32 = arith.constant 0 : i32
    %c0_i32_0 = arith.constant 0 : i32
    %c0_i32_1 = arith.constant 0 : i32
    return %c0_i32, %c0_i32_0 : i32, i32
  }
  func.func @transform_4(%arg0: i32) -> (i32, i32) {
    %c0_i32 = arith.constant 0 : i32
    %c0_i32_0 = arith.constant 0 : i32
    %c0_i32_1 = arith.constant 0 : i32
    return %c0_i32, %c0_i32_0 : i32, i32
  }
  func.func @transform_5(%arg0: i32) -> (i32, i32) {
    %c0_i32 = arith.constant 0 : i32
    %c0_i32_0 = arith.constant 0 : i32
    %c0_i32_1 = arith.constant 0 : i32
    return %c0_i32, %c0_i32_0 : i32, i32
  }
  func.func @transform_6(%arg0: i32) -> (i32, i32) {
    %c0_i32 = arith.constant 0 : i32
    %c0_i32_0 = arith.constant 0 : i32
    %c0_i32_1 = arith.constant 0 : i32
    return %c0_i32, %c0_i32_0 : i32, i32
  }
  func.func @transform_7(%arg0: i32) -> (i32, i32) {
    %c0_i32 = arith.constant 0 : i32
    %c0_i32_0 = arith.constant 0 : i32
    %c0_i32_1 = arith.constant 0 : i32
    return %c0_i32, %c0_i32_0 : i32, i32
  }
  func.func @transform_8(%arg0: i32) -> (i32, i32) {
    %c0_i32 = arith.constant 0 : i32
    %c0_i32_0 = arith.constant 0 : i32
    %c0_i32_1 = arith.constant 0 : i32
    return %c0_i32, %c0_i32_0 : i32, i32
  }
  func.func @transform_9(%arg0: i32) -> (i32, i32) {
    %c0_i32 = arith.constant 0 : i32
    %c0_i32_0 = arith.constant 0 : i32
    %c0_i32_1 = arith.constant 0 : i32
    return %c0_i32, %c0_i32_0 : i32, i32
  }
}

</mosaic_0001>

<bundles_post_ra>
// kernel: tpu_custom_call.1
= control target key start
LH: loop header
LB: loop body
LE: loop exit
PB: predicated region body
PF: predicated region fallthrough
CT: control target
= control target key end

     0   :  { %15 = vsyncpa [#allocation4], 0  ;;  %s2484_s0 = inlined_call_operand.hbm [shape: bf16[8,128], index: 0, kind: input, shape index: {}]   ;;  %s2485_s1 = inlined_call_operand.hbm [shape: f32[1,128], index: 1, kind: input, shape index: {}]   ;;  %s2486_s2 = inlined_call_operand.hbm [shape: bf16[128,384], index: 2, kind: input, shape index: {}]   ;;  %s2487_s3 = inlined_call_operand.hbm [shape: bf16[128,384], index: 3, kind: input, shape index: {}]   ;;  %s2488_s4 = inlined_call_operand.vmem [shape: f32[1,384], index: 4, kind: input, shape index: {}]   ;;  %s2489_s5 = inlined_call_operand.hbm [shape: f32[1,384], index: 5, kind: input, shape index: {}]   ;;  %s2490_s6 = inlined_call_operand.hbm [shape: bf16[128,128], index: 6, kind: input, shape index: {}]   ;;  %s2491_s7 = inlined_call_operand.vmem [shape: f32[1,128], index: 7, kind: input, shape index: {}]   ;;  %s2492_s8 = inlined_call_operand.hbm [shape: f32[8,128], index: 8, kind: output, shape index: {0}]   ;;  %s2493_s9 = inlined_call_operand.hbm [shape: f32[8,128], index: 9, kind: output, shape index: {1}]  }
   0x1   :  { %16 = vsyncpa [#allocation7], 0 }
   0x2   :  { %17 = vsyncpa [#allocation10], 0 }
   0x3   :  { %18 = vsyncpa [#allocation13], 0 }
   0x4   :  { %19 = vsyncpa [#allocation5], 0  ;;  %s37_s11 = sshll.u32 %s2485_s1, 4  ;;  %s38_s11 = int_to_ptr.hbm [resolvable:$true] %s37_s11 }
   0x5   :  { %20 = vsyncpa [#allocation16], 0  ;;  %s2072_s12 = smov [#allocation6]   ;;  %s60_s16 = sshll.u32 %s2487_s3, 4  ;;  %s61_s16 = int_to_ptr.hbm [resolvable:$true] %s60_s16 }
   0x6   :  { %s39_s13 = sshll.u32 %s2072_s12, 4  ;;  %s2073_s17 = smov [#allocation9]   ;;  %s40_s13 = int_to_ptr.vmem [resolvable:$true] %s39_s13 }
   0x7   :  { %42 = dma.hbm_to_vmem [thread:$0]  %s38_s11, 16, %s40_s13, [#allocation7]  }
   0x8   :  { %s62_s18 = sshll.u32 %s2073_s17, 4  ;;  %s26_s21 = sshll.u32 %s2484_s0, 4  ;;  %s63_s18 = int_to_ptr.vmem [resolvable:$true] %s62_s18  ;;  %s27_s21 = int_to_ptr.hbm [resolvable:$true] %s26_s21 }
   0x9   :  { %s2074_s1 = smov 192   ;;  %s2075_s22 = smov 12  }
   0xa   :  { %68 = dma.hbm_to_vmem [thread:$0]  %s61_s16, 3072, %s63_s18, [#allocation10], %s2074_s1, %s2074_s1, %s2075_s22  }
   0xb   :  { %s47_s25 = sshll.u32 %s2486_s2, 4  ;;  %s2076_s26 = smov [#allocation3]   ;;  %s48_s25 = int_to_ptr.hbm [resolvable:$true] %s47_s25 }
   0xc   :  { %s28_s27 = sshll.u32 %s2076_s26, 4  ;;  %s2077_s3 = smov [#allocation8]   ;;  %s29_s27 = int_to_ptr.vmem [resolvable:$true] %s28_s27 }
   0xd   :  { %31 = dma.hbm_to_vmem [thread:$0]  %s27_s21, 64, %s29_s27, [#allocation4]  }
   0xe   :  { %s49_s28 = sshll.u32 %s2077_s3, 4  ;;  %s76_s0 = sshll.u32 %s2489_s5, 4  ;;  %s50_s28 = int_to_ptr.vmem [resolvable:$true] %s49_s28  ;;  %s77_s0 = int_to_ptr.hbm [resolvable:$true] %s76_s0 }
   0xf   :  { %55 = dma.hbm_to_vmem [thread:$0]  %s48_s25, 3072, %s50_s28, [#allocation7], %s2074_s1, %s2074_s1, %s2075_s22  }
  0x10   :  { %s86_s12 = sshll.u32 %s2490_s6, 4  ;;  %s2078_s13 = smov [#allocation11]   ;;  %s87_s12 = int_to_ptr.hbm [resolvable:$true] %s86_s12 }
  0x11   :  { %s78_s2 = sshll.u32 %s2078_s13, 4  ;;  %s2079_s14 = smov [#allocation12]   ;;  %s79_s2 = int_to_ptr.vmem [resolvable:$true] %s78_s2 }
  0x12   :  { %81 = dma.hbm_to_vmem [thread:$0]  %s77_s0, 48, %s79_s2, [#allocation10]  }
  0x13   :  { %s88_s15 = sshll.u32 %s2079_s14, 4  ;;  %s2080_s16 = smov 64   ;;  %s89_s15 = int_to_ptr.vmem [resolvable:$true] %s88_s15 }
  0x14   :  { %s2081_s17 = smov 4  }
  0x15   :  { %94 = dma.hbm_to_vmem [thread:$0]  %s87_s12, 1024, %s89_s15, [#allocation13], %s2080_s16, %s2080_s16, %s2081_s17  }
  0x16   :  { %2060 = dma.done.wait [#allocation4], 64  }
  0x17   :  { %2061 = vsyncadd [#allocation4], 4294967232 }
  0x18   :  { %2062 = dma.done.wait [#allocation7], 3088  }
  0x19   :  { %2063 = vsyncadd [#allocation7], 4294964208 }
  0x1a   :  { %2064 = dma.done.wait [#allocation10], 3120  }
  0x1b   :  { %2065 = vsyncadd [#allocation10], 4294964176 }
  0x1c   :  { %2066 = dma.done.wait [#allocation13], 1024  }
  0x1d   :  { %2067 = vsyncadd [#allocation13], 4294966272  ;;  %v1569_v0 = vld [vmem:[#allocation8 + $0xa8] sm:$0xf]  ;;  %v1737_v1 = vld [vmem:[#allocation8 + $0xb0] sm:$0xf0] }
  0x1e   :  { %v1557_v2 = vld [vmem:[#allocation8 + $0x90] sm:$0xf]  ;;  %v1570_v3 = vor.u32 %v1737_v1, %v1569_v0  ;;  %v1734_v4 = vld [vmem:[#allocation8 + $0x98] sm:$0xf0]  ;;  %v1565_v8 = vld [vmem:[#allocation8 + $0x98] sm:$0xf] }
  0x1f   :  { %v1577_v5 = vld [vmem:[#allocation8 + $0xb0] sm:$0xf]  ;;  %v1738_v6 = vld [vmem:[#allocation8 + $0xb8] sm:$0xf0]  ;;  %v1558_v9 = vor.u32 %v1734_v4, %v1557_v2  ;;  %v1545_v10 = vld [vmem:[#allocation8 + $0x78] sm:$0xf] }
  0x20   :  { %v1578_v7 = vor.u32 %v1738_v6, %v1577_v5  ;;  %290 = vmatpush.bf16.msra.mxu0 %v1570_v3  ;;  %v1735_v11 = vld [vmem:[#allocation8 + $0xa0] sm:$0xf0]  ;;  %v1736_v14 = vld [vmem:[#allocation8 + $0xac] sm:$0xf]  ;;  %v1571_v15 = vld [vmem:[#allocation8 + $0xb4] sm:$0xf0] }
  0x21   :  { %v1731_v12 = vld [vmem:[#allocation8 + $0x80] sm:$0xf0]  ;;  %v1566_v13 = vor.u32 %v1735_v11, %v1565_v8  ;;  %v1574_v16 = vor.u32 %v1736_v14, %v1571_v15  ;;  %v1553_v17 = vld [vmem:[#allocation8 + $0x80] sm:$0xf]  ;;  %v1732_v18 = vld [vmem:[#allocation8 + $0x88] sm:$0xf0] }
  0x22   :  { %316 = vmatpush.bf16.msra.mxu2 %v1578_v7  ;;  %v1733_v19 = vld [vmem:[#allocation8 + $0x94] sm:$0xf]  ;;  %v1559_v20 = vld [vmem:[#allocation8 + $0x9c] sm:$0xf0]  ;;  %v1665_v21 = vld [vmem:[#allocation9 + $0xa8] sm:$0xf]  ;;  %v1546_v22 = vor.u32 %v1731_v12, %v1545_v10  ;;  %v1554_v27 = vor.u32 %v1732_v18, %v1553_v17 }
  0x23   :  { %v1533_v23 = vld [vmem:[#allocation8 + $0x60] sm:$0xf]  ;;  %v1728_v24 = vld [vmem:[#allocation8 + $0x68] sm:$0xf0]  ;;  %303 = vmatpush.bf16.msra.mxu1 %v1574_v16  ;;  %v1562_v25 = vor.u32 %v1733_v19, %v1559_v20  ;;  %v1761_v26 = vld [vmem:[#allocation9 + $0xb0] sm:$0xf0] }
  0x24   :  { %291 = vmatpush.bf16.msra.mxu0 %v1558_v9  ;;  %v2152_v28 = vor.u32 %v1761_v26, %v1665_v21  ;;  %v1541_v29 = vld [vmem:[#allocation8 + $0x68] sm:$0xf]  ;;  %v1729_v30 = vld [vmem:[#allocation8 + $0x70] sm:$0xf0]  ;;  %v1730_v31 = vld [vmem:[#allocation8 + $0x7c] sm:$0xf]  ;;  %v1534_v36 = vor.u32 %v1728_v24, %v1533_v23 }
  0x25   :  { %v1547_v32 = vld [vmem:[#allocation8 + $0x84] sm:$0xf0]  ;;  %v1653_v33 = vld [vmem:[#allocation9 + $0x90] sm:$0xf]  ;;  %v1758_v34 = vld [vmem:[#allocation9 + $0x98] sm:$0xf0]  ;;  %v1542_v41 = vor.u32 %v1729_v30, %v1541_v29 }
  0x26   :  { %317 = vmatpush.bf16.msra.mxu2 %v1566_v13  ;;  %503 = vmatpush.bf16.msra.mxu3 %v2152_v28  ;;  %v2155_v35 = vor.u32 %v1758_v34, %v1653_v33  ;;  %v1521_v37 = vld [vmem:[#allocation8 + $0x48] sm:$0xf]  ;;  %v1725_v38 = vld [vmem:[#allocation8 + $0x50] sm:$0xf0]  ;;  %v1550_v39 = vor.u32 %v1730_v31, %v1547_v32  ;;  %v1727_v40 = vld [vmem:[#allocation8 + $0x64] sm:$0xf] }
  0x27   :  { %304 = vmatpush.bf16.msra.mxu1 %v1562_v25  ;;  %v1535_v42 = vld [vmem:[#allocation8 + $0x6c] sm:$0xf0]  ;;  %v1641_v43 = vld [vmem:[#allocation9 + $0x78] sm:$0xf]  ;;  %v1755_v44 = vld [vmem:[#allocation9 + $0x80] sm:$0xf0]  ;;  %v1522_v48 = vor.u32 %v1725_v38, %v1521_v37 }
  0x28   :  { %292 = vmatpush.bf16.msra.mxu0 %v1546_v22  ;;  %v1529_v45 = vld [vmem:[#allocation8 + $0x50] sm:$0xf]  ;;  %v1726_v46 = vld [vmem:[#allocation8 + $0x58] sm:$0xf0]  ;;  %v2158_v47 = vor.u32 %v1755_v44, %v1641_v43  ;;  %v1538_v50 = vor.u32 %v1727_v40, %v1535_v42  ;;  %v1629_v51 = vld [vmem:[#allocation9 + $0x60] sm:$0xf] }
  0x29   :  { %v1509_v49 = vld [vmem:[#allocation8 + $0x30] sm:$0xf]  ;;  %v1752_v52 = vld [vmem:[#allocation9 + $0x68] sm:$0xf0]  ;;  %v1722_v53 = vld [vmem:[#allocation8 + $0x38] sm:$0xf0]  ;;  %v1530_v54 = vor.u32 %v1726_v46, %v1529_v45 }
  0x2a   :  { %318 = vmatpush.bf16.msra.mxu2 %v1554_v27  ;;  %504 = vmatpush.bf16.msra.mxu3 %v2155_v35  ;;  %v1724_v55 = vld [vmem:[#allocation8 + $0x4c] sm:$0xf]  ;;  %v1523_v56 = vld [vmem:[#allocation8 + $0x54] sm:$0xf0]  ;;  %v1723_v58 = vld [vmem:[#allocation8 + $0x40] sm:$0xf0]  ;;  %v2161_v59 = vor.u32 %v1752_v52, %v1629_v51  ;;  %v1510_v60 = vor.u32 %v1722_v53, %v1509_v49 }
  0x2b   :  { %305 = vmatpush.bf16.msra.mxu1 %v1550_v39  ;;  %v1517_v57 = vld [vmem:[#allocation8 + $0x38] sm:$0xf]  ;;  %v1526_v62 = vor.u32 %v1724_v55, %v1523_v56  ;;  %v1617_v63 = vld [vmem:[#allocation9 + $0x48] sm:$0xf]  ;;  %v1749_v0 = vld [vmem:[#allocation9 + $0x50] sm:$0xf0] }
  0x2c   :  { %293 = vmatpush.bf16.msra.mxu0 %v1534_v36  ;;  %v1497_v61 = vld [vmem:[#allocation8 + $0x18] sm:$0xf]  ;;  %v1719_v1 = vld [vmem:[#allocation8 + $0x20] sm:$0xf0]  ;;  %v1518_v2 = vor.u32 %v1723_v58, %v1517_v57  ;;  %v1721_v3 = vld [vmem:[#allocation8 + $0x34] sm:$0xf]  ;;  %v2164_v8 = vor.u32 %v1749_v0, %v1617_v63 }
  0x2d   :  { %v1511_v4 = vld [vmem:[#allocation8 + $0x3c] sm:$0xf0]  ;;  %v1720_v6 = vld [vmem:[#allocation8 + $0x28] sm:$0xf0]  ;;  %v1498_v9 = vor.u32 %v1719_v1, %v1497_v61  ;;  %v1605_v12 = vld [vmem:[#allocation9 + $0x30] sm:$0xf] }
  0x2e   :  { %319 = vmatpush.bf16.msra.mxu2 %v1542_v41  ;;  %505 = vmatpush.bf16.msra.mxu3 %v2158_v47  ;;  %v1505_v5 = vld [vmem:[#allocation8 + $0x20] sm:$0xf]  ;;  %v1716_v10 = vld [vmem:[#allocation8 + $0x8] sm:$0xf0]  ;;  %v1514_v11 = vor.u32 %v1721_v3, %v1511_v4  ;;  %v1746_v13 = vld [vmem:[#allocation9 + $0x38] sm:$0xf0] }
  0x2f   :  { %306 = vmatpush.bf16.msra.mxu1 %v1538_v50  ;;  %v1485_v7 = vld [vmem:[#allocation8] sm:$0xf]  ;;  %v1760_v14 = vld [vmem:[#allocation9 + $0xac] sm:$0xf]  ;;  %v1506_v15 = vor.u32 %v1720_v6, %v1505_v5  ;;  %v1718_v16 = vld [vmem:[#allocation8 + $0x1c] sm:$0xf]  ;;  %v2167_v21 = vor.u32 %v1746_v13, %v1605_v12 }
  0x30   :  { %294 = vmatpush.bf16.msra.mxu0 %v1522_v48  ;;  %v1499_v17 = vld [vmem:[#allocation8 + $0x24] sm:$0xf0]  ;;  %v1667_v18 = vld [vmem:[#allocation9 + $0xb4] sm:$0xf0]  ;;  %v1717_v20 = vld [vmem:[#allocation8 + $0x10] sm:$0xf0]  ;;  %v1486_v22 = vor.u32 %v1716_v10, %v1485_v7 }
  0x31   :  { %v1493_v19 = vld [vmem:[#allocation8 + $0x8] sm:$0xf]  ;;  %v1757_v23 = vld [vmem:[#allocation9 + $0x94] sm:$0xf]  ;;  %v1502_v24 = vor.u32 %v1718_v16, %v1499_v17  ;;  %v1593_v25 = vld [vmem:[#allocation9 + $0x18] sm:$0xf]  ;;  %v2169_v27 = vor.u32 %v1760_v14, %v1667_v18 }
  0x32   :  { %320 = vmatpush.bf16.msra.mxu2 %v1530_v54  ;;  %506 = vmatpush.bf16.msra.mxu3 %v2161_v59  ;;  %v1743_v26 = vld [vmem:[#allocation9 + $0x20] sm:$0xf0]  ;;  %v1494_v29 = vor.u32 %v1717_v20, %v1493_v19  ;;  %v1487_v31 = vld [vmem:[#allocation8 + $0xc] sm:$0xf0]  ;;  %v1655_v32 = vld [vmem:[#allocation9 + $0x9c] sm:$0xf0] }
  0x33   :  { %307 = vmatpush.bf16.msra.mxu1 %v1526_v62  ;;  %v1715_v30 = vld [vmem:[#allocation8 + $0x4] sm:$0xf]  ;;  %v1673_v33 = vld [vmem:[#allocation9 + $0xb0] sm:$0xf]  ;;  %v1762_v34 = vld [vmem:[#allocation9 + $0xb8] sm:$0xf0]  ;;  %v2172_v36 = vor.u32 %v1743_v26, %v1593_v25  ;;  %v2175_v41 = vor.u32 %v1757_v23, %v1655_v32 }
  0x34   :  { %295 = vmatpush.bf16.msra.mxu0 %v1510_v60  ;;  %v121_v37 = vld [vmem:[#allocation3] sm:$0xf]  ;;  %v1490_v38 = vor.u32 %v1715_v30, %v1487_v31  ;;  %v1581_v39 = vld [vmem:[#allocation9] sm:$0xf]  ;;  %v1740_v40 = vld [vmem:[#allocation9 + $0x8] sm:$0xf0]  ;;  %v2177_v43 = vor.u32 %v1762_v34, %v1673_v33 }
  0x35   :  { %v1754_v42 = vld [vmem:[#allocation9 + $0x7c] sm:$0xf]  ;;  %v1643_v44 = vld [vmem:[#allocation9 + $0x84] sm:$0xf0]  ;;  %v1661_v45 = vld [vmem:[#allocation9 + $0x98] sm:$0xf]  ;;  %v2181_v48 = vor.u32 %v1740_v40, %v1581_v39 }
  0x36   :  { %321 = vmatpush.bf16.msra.mxu2 %v1518_v2  ;;  %507 = vmatpush.bf16.msra.mxu3 %v2164_v8  ;;  %v1759_v46 = vld [vmem:[#allocation9 + $0xa0] sm:$0xf0]  ;;  %v2183_v49 = vld [vmem:[#allocation6] sm:$0x1]  ;;  %v2186_v50 = vor.u32 %v1754_v42, %v1643_v44  ;;  %v1631_v53 = vld [vmem:[#allocation9 + $0x6c] sm:$0xf0] }
  0x37   :  { %308 = vmatpush.bf16.msra.mxu1 %v1514_v11  ;;  %v1751_v51 = vld [vmem:[#allocation9 + $0x64] sm:$0xf]  ;;  %v2189_v52 = vor.u32 %v1759_v46, %v1661_v45  ;;  %v2193_v54 = vpack.c.bf16 %v2183_v49, %v2183_v49  ;;  %v1649_v55 = vld [vmem:[#allocation9 + $0x80] sm:$0xf]  ;;  %v1756_v56 = vld [vmem:[#allocation9 + $0x88] sm:$0xf0] }
  0x38   :  { %296 = vmatpush.bf16.msra.mxu0 %v1498_v9  ;;  %v2199_v57 = vor.u32 %v1751_v51, %v1631_v53  ;;  %v1748_v58 = vld [vmem:[#allocation9 + $0x4c] sm:$0xf]  ;;  %v2202_v60 = vor.u32 %v1756_v56, %v1649_v55  ;;  %v1619_v61 = vld [vmem:[#allocation9 + $0x54] sm:$0xf0]  ;;  %v1637_v62 = vld [vmem:[#allocation9 + $0x68] sm:$0xf] }
  0x39   :  { %v1753_v63 = vld [vmem:[#allocation9 + $0x70] sm:$0xf0]  ;;  %v2208_v0 = vor.u32 %v1748_v58, %v1619_v61  ;;  %v1607_v3 = vld [vmem:[#allocation9 + $0x3c] sm:$0xf0]  ;;  %v1625_v4 = vld [vmem:[#allocation9 + $0x50] sm:$0xf] }
  0x3a   :  { %322 = vmatpush.bf16.msra.mxu2 %v1506_v15  ;;  %508 = vmatpush.bf16.msra.mxu3 %v2167_v21  ;;  %v1745_v1 = vld [vmem:[#allocation9 + $0x34] sm:$0xf]  ;;  %v2211_v2 = vor.u32 %v1753_v63, %v1637_v62  ;;  %v1750_v5 = vld [vmem:[#allocation9 + $0x58] sm:$0xf0]  ;;  %v1595_v10 = vld [vmem:[#allocation9 + $0x24] sm:$0xf0] }
  0x3b   :  { %309 = vmatpush.bf16.msra.mxu1 %v1502_v24  ;;  %v2216_v6 = vor.u32 %v1745_v1, %v1607_v3  ;;  %v1742_v7 = vld [vmem:[#allocation9 + $0x1c] sm:$0xf]  ;;  %v2219_v9 = vor.u32 %v1750_v5, %v1625_v4  ;;  %v1613_v11 = vld [vmem:[#allocation9 + $0x38] sm:$0xf]  ;;  %v1747_v12 = vld [vmem:[#allocation9 + $0x40] sm:$0xf0] }
  0x3c   :  { %297 = vmatpush.bf16.msra.mxu0 %v1486_v22  ;;  %v2224_v13 = vor.u32 %v1742_v7, %v1595_v10  ;;  %v1739_v14 = vld [vmem:[#allocation9 + $0x4] sm:$0xf]  ;;  %v2227_v15 = vor.u32 %v1747_v12, %v1613_v11  ;;  %v1583_v16 = vld [vmem:[#allocation9 + $0xc] sm:$0xf0]  ;;  %v1601_v17 = vld [vmem:[#allocation9 + $0x20] sm:$0xf] }
  0x3d   :  { %v1744_v18 = vld [vmem:[#allocation9 + $0x28] sm:$0xf0]  ;;  %v2232_v19 = vor.u32 %v1739_v14, %v1583_v16  ;;  %v1589_v22 = vld [vmem:[#allocation9 + $0x8] sm:$0xf]  ;;  %v1741_v23 = vld [vmem:[#allocation9 + $0x10] sm:$0xf0] }
  0x3e   :  { %323 = vmatpush.bf16.msra.mxu2 %v1494_v29  ;;  %509 = vmatpush.bf16.msra.mxu3 %v2172_v36  ;;  %v2235_v20 = vor.u32 %v1744_v18, %v1601_v17  ;;  %v2241_v24 = vor.u32 %v1741_v23, %v1589_v22  ;;  %v154_v25 = vld [vmem:[%s2488_s4] sm:$0x7]  ;;  %vm545_vm0 = vcmask 1040384   ;;  %s2082_s26 = smov [#allocation15]   ;;  %s1465_s29 = sshll.u32 %s2493_s9, 4  ;;  %s1466_s29 = int_to_ptr.hbm [resolvable:$true] %s1465_s29 }
  0x3f   :  { %298 = vmatmul.bf16.vlgmr.msra.gmra.mxu0 %v121_v37  ;;  %310 = vmatpush.bf16.msra.mxu1 %v1490_v38  ;;  %v156_v26 = vperm.slane %v154_v25, 0  ;;  %v157_v31 = vperm.slane %v154_v25, 1  ;;  %v158_v33 = vperm.slane %v154_v25, 2  ;;  %v364_v46 = vld [vmem:[#allocation11] sm:$0x7]  ;;  %s1463_s27 = sshll.u32 %s2082_s26, 4  ;;  %s1464_s27 = int_to_ptr.vmem [resolvable:$true] %s1463_s27 }
  0x40   :  { %516 = vmatpush.bf16.msrb.mxu0 %v2169_v27  ;;  %v2300_v51 = vperm.slane %v364_v46, 0  ;;  %v2302_v53 = vperm.slane %v364_v46, 1  ;;  %v2307_v14 = vperm.slane %v364_v46, 2  ;;  %s1454_s10 = sshll.u32 %s2492_s8, 4  ;;  %s1455_s10 = int_to_ptr.hbm [resolvable:$true] %s1454_s10 }
  0x41   :  { %324 = vmatmul.bf16.vlgmr.msra.gmra.mxu2 %v121_v37 }
  0x42   :  { %609 = vmatpush.bf16.msrb.mxu2 %v2152_v28  ;;  %311 = vmatmul.bf16.vlgmr.msra.gmra.mxu1 %v121_v37 }
  0x43   :  { %529 = vmatpush.bf16.msrb.mxu1 %v2177_v43  ;;  %510 = vmatpush.bf16.msra.mxu3 %v2181_v48 }
  0x44   :  { %517 = vmatpush.bf16.msrb.mxu0 %v2175_v41 }
  0x46   :  { %610 = vmatpush.bf16.msrb.mxu2 %v2155_v35  ;;  %511 = vmatmul.bf16.vlgmr.msra.gmra.mxu3 %v2193_v54 }
  0x47   :  { %622 = vmatpush.bf16.msrb.mxu3 %v2169_v27  ;;  %530 = vmatpush.bf16.msrb.mxu1 %v2189_v52 }
  0x48   :  { %518 = vmatpush.bf16.msrb.mxu0 %v2186_v50 }
  0x4a   :  { %611 = vmatpush.bf16.msrb.mxu2 %v2158_v47 }
  0x4b   :  { %623 = vmatpush.bf16.msrb.mxu3 %v2175_v41  ;;  %531 = vmatpush.bf16.msrb.mxu1 %v2202_v60 }
  0x4c   :  { %519 = vmatpush.bf16.msrb.mxu0 %v2199_v57 }
  0x4e   :  { %612 = vmatpush.bf16.msrb.mxu2 %v2161_v59 }
  0x4f   :  { %624 = vmatpush.bf16.msrb.mxu3 %v2186_v50  ;;  %532 = vmatpush.bf16.msrb.mxu1 %v2211_v2 }
  0x50   :  { %520 = vmatpush.bf16.msrb.mxu0 %v2208_v0 }
  0x52   :  { %613 = vmatpush.bf16.msrb.mxu2 %v2164_v8 }
  0x53   :  { %625 = vmatpush.bf16.msrb.mxu3 %v2199_v57  ;;  %533 = vmatpush.bf16.msrb.mxu1 %v2219_v9 }
  0x54   :  { %521 = vmatpush.bf16.msrb.mxu0 %v2216_v6 }
  0x56   :  { %614 = vmatpush.bf16.msrb.mxu2 %v2167_v21 }
  0x57   :  { %626 = vmatpush.bf16.msrb.mxu3 %v2208_v0  ;;  %534 = vmatpush.bf16.msrb.mxu1 %v2227_v15 }
  0x58   :  { %522 = vmatpush.bf16.msrb.mxu0 %v2224_v13 }
  0x5a   :  { %615 = vmatpush.bf16.msrb.mxu2 %v2172_v36 }
  0x5b   :  { %627 = vmatpush.bf16.msrb.mxu3 %v2216_v6  ;;  %535 = vmatpush.bf16.msrb.mxu1 %v2235_v20 }
  0x5c   :  { %523 = vmatpush.bf16.msrb.mxu0 %v2232_v19 }
  0x5e   :  { %616 = vmatpush.bf16.msrb.mxu2 %v2181_v48 }
  0x5f   :  { %524 = vmatmul.bf16.vlgmr.msrb.gmra.mxu0 %v2193_v54  ;;  %628 = vmatpush.bf16.msrb.mxu3 %v2224_v13 }
  0x60   :  { %635 = vmatpush.bf16.msra.mxu0 %v2177_v43  ;;  %536 = vmatpush.bf16.msrb.mxu1 %v2241_v24 }
  0x62   :  { %727 = vmatpush.bf16.msra.mxu2 %v2169_v27 }
  0x63   :  { %537 = vmatmul.bf16.vlgmr.msrb.gmra.mxu1 %v2193_v54  ;;  %629 = vmatpush.bf16.msrb.mxu3 %v2232_v19 }
  0x64   :  { %636 = vmatpush.bf16.msra.mxu0 %v2189_v52  ;;  %714 = vmatpush.bf16.msra.mxu1 %v2152_v28 }
  0x66   :  { %728 = vmatpush.bf16.msra.mxu2 %v2175_v41 }
  0x67   :  { %740 = vmatpush.bf16.msra.mxu3 %v2177_v43 }
  0x68   :  { %637 = vmatpush.bf16.msra.mxu0 %v2202_v60  ;;  %715 = vmatpush.bf16.msra.mxu1 %v2155_v35 }
  0x6a   :  { %729 = vmatpush.bf16.msra.mxu2 %v2186_v50 }
  0x6b   :  { %741 = vmatpush.bf16.msra.mxu3 %v2189_v52 }
  0x6c   :  { %638 = vmatpush.bf16.msra.mxu0 %v2211_v2  ;;  %716 = vmatpush.bf16.msra.mxu1 %v2158_v47 }
  0x6e   :  { %730 = vmatpush.bf16.msra.mxu2 %v2199_v57 }
  0x6f   :  { %742 = vmatpush.bf16.msra.mxu3 %v2202_v60 }
  0x70   :  { %639 = vmatpush.bf16.msra.mxu0 %v2219_v9  ;;  %717 = vmatpush.bf16.msra.mxu1 %v2161_v59 }
  0x72   :  { %731 = vmatpush.bf16.msra.mxu2 %v2208_v0 }
  0x73   :  { %743 = vmatpush.bf16.msra.mxu3 %v2211_v2 }
  0x74   :  { %640 = vmatpush.bf16.msra.mxu0 %v2227_v15  ;;  %718 = vmatpush.bf16.msra.mxu1 %v2164_v8 }
  0x76   :  { %732 = vmatpush.bf16.msra.mxu2 %v2216_v6 }
  0x77   :  { %744 = vmatpush.bf16.msra.mxu3 %v2219_v9 }
  0x78   :  { %641 = vmatpush.bf16.msra.mxu0 %v2235_v20  ;;  %719 = vmatpush.bf16.msra.mxu1 %v2167_v21 }
  0x7a   :  { %733 = vmatpush.bf16.msra.mxu2 %v2224_v13 }
  0x7b   :  { %745 = vmatpush.bf16.msra.mxu3 %v2227_v15 }
  0x7c   :  { %642 = vmatpush.bf16.msra.mxu0 %v2241_v24  ;;  %720 = vmatpush.bf16.msra.mxu1 %v2172_v36 }
  0x7e   :  { %734 = vmatpush.bf16.msra.mxu2 %v2232_v19 }
  0x7f   :  { %746 = vmatpush.bf16.msra.mxu3 %v2235_v20 }
  0x80   :  { %819 = vmatpush.bf16.msrb.mxu0 %v2152_v28  ;;  %721 = vmatpush.bf16.msra.mxu1 %v2181_v48 }
  0x83   :  { %747 = vmatpush.bf16.msra.mxu3 %v2241_v24 }
  0x84   :  { %832 = vmatpush.bf16.msrb.mxu1 %v2169_v27  ;;  %820 = vmatpush.bf16.msrb.mxu0 %v2155_v35 }
  0x88   :  { %833 = vmatpush.bf16.msrb.mxu1 %v2175_v41  ;;  %821 = vmatpush.bf16.msrb.mxu0 %v2158_v47 }
  0x8c   :  { %834 = vmatpush.bf16.msrb.mxu1 %v2186_v50  ;;  %822 = vmatpush.bf16.msrb.mxu0 %v2161_v59 }
  0x90   :  { %835 = vmatpush.bf16.msrb.mxu1 %v2199_v57  ;;  %823 = vmatpush.bf16.msrb.mxu0 %v2164_v8 }
  0x94   :  { %836 = vmatpush.bf16.msrb.mxu1 %v2208_v0  ;;  %824 = vmatpush.bf16.msrb.mxu0 %v2167_v21 }
  0x98   :  { %837 = vmatpush.bf16.msrb.mxu1 %v2216_v6  ;;  %825 = vmatpush.bf16.msrb.mxu0 %v2172_v36 }
  0x9c   :  { %838 = vmatpush.bf16.msrb.mxu1 %v2224_v13  ;;  %826 = vmatpush.bf16.msrb.mxu0 %v2181_v48 }
  0xa0   :  { %839 = vmatpush.bf16.msrb.mxu1 %v2232_v19 }
  0xbc   :  { %v299_v29 = vpop.f32.mrf.mxu0 }
  0xbd   :  { %v300_v30 = vadd.f32 %v299_v29, %v156_v26 }
  0xbf   :  { %329 = vst [vmem:[#allocation2] sm:$0xff] %v300_v30  ;;  %v312_v32 = vpop.f32.mrf.mxu1 }
  0xc0   :  { %v313_v34 = vadd.f32 %v312_v32, %v157_v31 }
  0xc2   :  { %330 = vst [vmem:[#allocation2 + $0x8] sm:$0xff] %v313_v34 }
  0xc4   :  { %v325_v37 = vpop.f32.mrf.mxu2  ;;  %v301_v38 = vpop.f32.mrf.mxu0 }
  0xc5   :  { %v326_v39 = vadd.f32 %v325_v37, %v158_v33 }
  0xc7   :  { %331 = vst [vmem:[#allocation2 + $0x10] sm:$0xff] %v326_v39  ;;  %v314_v40 = vpop.f32.mrf.mxu1 }
  0xc9   :  { %v512_v42 = vpop.f32.mrf.mxu3 }
  0xca   :  { %v513_v55 = vadd.f32 %v512_v42, %v2300_v51 }
  0xcc   :  { %v327_v44 = vpop.f32.mrf.mxu2 }
  0xce   :  { %v367_v62 = vld [vmem:[#allocation2] ss:$8 sm:$0x7] }
  0xcf   :  { %v570_v32 = vrot.slane %v367_v62, 2 }
  0xd1   :  { %v514_v45 = vpop.f32.mrf.mxu3 }
  0xdc   :  { %v525_v54 = vpop.f32.mrf.mxu0 }
  0xdd   :  { %v526_v56 = vadd.f32 %v525_v54, %v2302_v53 }
  0xdf   :  { %v544_v58 = vrot.slane %v526_v56, 7 }
  0xe0   :  { %v538_v61 = vpop.f32.mrf.mxu1 }
  0xe1   :  { %v546_v63 = vsel %vm545_vm0, %v513_v55, %v544_v58  ;;  %v539_v23 = vadd.f32 %v538_v61, %v2307_v14 }
  0xe2   :  { %v548_v1 = vadd.f32 %v546_v63, %v367_v62 }
  0xe4   :  { %v1675_v3 = vmul.f32 -1.442695, %v548_v1  ;;  %v527_v4 = vpop.f32.mrf.mxu0 }
  0xe6   :  { %1800 = vpow2.f32 %v1675_v3 }
  0xe8   :  { %v540_v5 = vpop.f32.mrf.mxu1 }
  0xec   :  { %v1801_v7 = vpop.eup %1800 }
  0xed   :  { %v552_v10 = vadd.f32 1.0, %v1801_v7 }
  0xef   :  { %1802 = vrcp.f32 %v552_v10  ;;  %v564_v17 = vand.u32 2147483648, %v552_v10  ;;  %v562_v22 = vand.u32 2147483647, %v552_v10  ;;  %vm558_vm2 = vweird.f32 %v552_v10 }
  0xf1   :  { %v565_v26 = vor.u32 1.1754944e-38, %v564_v17  ;;  %vm563_vm4 = vcmp.eq.f32.partialorder %v562_v22, 8.507059e+37 }
  0xf5   :  { %v1803_v11 = vpop.eup %1802 }
  0xf6   :  { %v554_v12 = vmul.f32 %v1803_v11, %v552_v10  ;;  %vm559_vm1 = vweird.f32 %v1803_v11 }
  0xf7   :  { %vm560_vm3 = vmor %vm558_vm2, %vm559_vm1 }
  0xf8   :  { %v555_v16 = vsub.f32 1.0, %v554_v12 }
  0xfa   :  { %v556_v18 = vmul.f32 %v1803_v11, %v555_v16 }
  0xfc   :  { %v557_v25 = vadd.f32 %v1803_v11, %v556_v18 }
  0xfe   :  { %v561_v29 = vsel %vm560_vm3, %v1803_v11, %v557_v25 }
  0xff   :  { %v566_v30 = vsel %vm563_vm4, %v565_v26, %v561_v29 }
 0x100   :  { %v568_v31 = vmul.f32 %v566_v30, %v539_v23  ;;  %v575_v34 = vrot.slane %v566_v30, 1  ;;  %v608_v30 = vld [vmem:[#allocation2 + $0x1] ss:$8 sm:$0x7] }
 0x102   :  { %v572_v33 = vadd.f32 %v570_v32, %v568_v31  ;;  %v577_v37 = vsub.f32 1.0, %v575_v34  ;;  %v579_v40 = vmul.f32 %v575_v34, %v2183_v49 }
 0x104   :  { %1804 = vtanh.f32 %v572_v33 }
 0x10a   :  { %v1805_v38 = vpop.eup %1804 }
 0x10b   :  { %v578_v39 = vmul.f32 %v1805_v38, %v577_v37 }
 0x10d   :  { %v580_v42 = vadd.f32 %v579_v40, %v578_v39 }
 0x10f   :  { %v581_v44 = vmul.f32 %v580_v42, %v580_v42 }
 0x111   :  { %v582_v45 = vsel %vm545_vm0, %v581_v44, 0.0 }
 0x112   :  { %583 = vadd.xlane.f32.xlu0 %v582_v45 }
 0x185   :  { %v584_v46 = vpop.xlane.xlu0 %583 }
 0x186   :  { %v585_v54 = vrot.slane %v584_v46, 4 }
 0x188   :  { %v586_v55 = vadd.f32 %v585_v54, %v584_v46 }
 0x18a   :  { %v587_v56 = vrot.slane %v586_v55, 2 }
 0x18c   :  { %v588_v58 = vadd.f32 %v587_v56, %v586_v55 }
 0x18e   :  { %v589_v61 = vrot.slane %v588_v58, 1 }
 0x190   :  { %v590_v62 = vadd.f32 %v589_v61, %v588_v58 }
 0x192   :  { %1771 = vpush %v590_v62 }
 0x1c3   :  { %s1772_s4 = spop %1771 }
 0x1c4   :  { %v592_v63 = vstv %s1772_s4 }
 0x1c5   :  { %v593_v1 = vadd.f32 1e-30, %v592_v63  ;;  %v675_v63 = vrot.slane %v608_v30, 2 }
 0x1c7   :  { %1806 = vrsqrt.f32 %v593_v1  ;;  %vm600_vm6 = vweird.f32 %v593_v1 }
 0x1cd   :  { %v1807_v3 = vpop.eup %1806 }
 0x1ce   :  { %v595_v4 = vmul.f32 %v1807_v3, %v593_v1  ;;  %vm601_vm5 = vweird.f32 %v1807_v3 }
 0x1cf   :  { %vm602_vm7 = vmor %vm600_vm6, %vm601_vm5 }
 0x1d0   :  { %v596_v49 = vmul.f32 %v1807_v3, %v595_v4 }
 0x1d2   :  { %v597_v5 = vmul.f32 0.5, %v596_v49 }
 0x1d4   :  { %v598_v7 = vsub.f32 1.5, %v597_v5 }
 0x1d6   :  { %v599_v10 = vmul.f32 %v1807_v3, %v598_v7 }
 0x1d8   :  { %v603_v11 = vsel %vm602_vm7, %v1807_v3, %v599_v10 }
 0x1d9   :  { %v2312_v12 = vmul.f32 %v603_v11, %v580_v42 }
 0x1db   :  { %605 = vst [vmem:[#allocation15] sm:$0x1] %v2312_v12  ;;  %v606_v16 = vpack.c.bf16 %v2312_v12, %v2312_v12 }
 0x1dd   :  { %617 = vmatmul.bf16.vlgmr.msrb.gmra.mxu2 %v606_v16  ;;  %630 = vmatmul.bf16.vlgmr.msrb.gmra.mxu3 %v606_v16 }
 0x1de   :  { %643 = vmatmul.bf16.vlgmr.msra.gmra.mxu0 %v606_v16  ;;  %845 = vmatpush.bf16.msrb.mxu2 %v2177_v43 }
 0x1df   :  { %924 = vmatpush.bf16.msrb.mxu3 %v2152_v28  ;;  %937 = vmatpush.bf16.msra.mxu0 %v2169_v27 }
 0x1e2   :  { %846 = vmatpush.bf16.msrb.mxu2 %v2189_v52 }
 0x1e3   :  { %925 = vmatpush.bf16.msrb.mxu3 %v2155_v35  ;;  %938 = vmatpush.bf16.msra.mxu0 %v2175_v41 }
 0x1e6   :  { %847 = vmatpush.bf16.msrb.mxu2 %v2202_v60 }
 0x1e7   :  { %926 = vmatpush.bf16.msrb.mxu3 %v2158_v47  ;;  %939 = vmatpush.bf16.msra.mxu0 %v2186_v50 }
 0x1ea   :  { %848 = vmatpush.bf16.msrb.mxu2 %v2211_v2 }
 0x1eb   :  { %927 = vmatpush.bf16.msrb.mxu3 %v2161_v59  ;;  %940 = vmatpush.bf16.msra.mxu0 %v2199_v57 }
 0x1ee   :  { %849 = vmatpush.bf16.msrb.mxu2 %v2219_v9 }
 0x1ef   :  { %928 = vmatpush.bf16.msrb.mxu3 %v2164_v8  ;;  %941 = vmatpush.bf16.msra.mxu0 %v2208_v0 }
 0x1f2   :  { %850 = vmatpush.bf16.msrb.mxu2 %v2227_v15 }
 0x1f3   :  { %929 = vmatpush.bf16.msrb.mxu3 %v2167_v21  ;;  %942 = vmatpush.bf16.msra.mxu0 %v2216_v6 }
 0x1f6   :  { %851 = vmatpush.bf16.msrb.mxu2 %v2235_v20 }
 0x1f7   :  { %930 = vmatpush.bf16.msrb.mxu3 %v2172_v36  ;;  %943 = vmatpush.bf16.msra.mxu0 %v2224_v13 }
 0x1fa   :  { %852 = vmatpush.bf16.msrb.mxu2 %v2241_v24 }
 0x1fb   :  { %931 = vmatpush.bf16.msrb.mxu3 %v2181_v48  ;;  %944 = vmatpush.bf16.msra.mxu0 %v2232_v19 }
 0x25b   :  { %v644_v17 = vpop.f32.mrf.mxu0 }
 0x25c   :  { %v645_v58 = vadd.f32 %v644_v17, %v2307_v14 }
 0x260   :  { %v618_v18 = vpop.f32.mrf.mxu2  ;;  %v631_v22 = vpop.f32.mrf.mxu3 }
 0x261   :  { %v632_v23 = vadd.f32 %v631_v22, %v2302_v53  ;;  %v619_v25 = vadd.f32 %v618_v18, %v2300_v51 }
 0x263   :  { %v650_v26 = vrot.slane %v632_v23, 7  ;;  %v646_v29 = vpop.f32.mrf.mxu0 }
 0x265   :  { %v651_v31 = vsel %vm545_vm0, %v619_v25, %v650_v26 }
 0x266   :  { %v653_v32 = vadd.f32 %v651_v31, %v608_v30 }
 0x268   :  { %v1676_v33 = vmul.f32 -1.442695, %v653_v32  ;;  %v620_v34 = vpop.f32.mrf.mxu2  ;;  %v633_v37 = vpop.f32.mrf.mxu3 }
 0x26a   :  { %1808 = vpow2.f32 %v1676_v33 }
 0x270   :  { %v1809_v38 = vpop.eup %1808 }
 0x271   :  { %v657_v39 = vadd.f32 1.0, %v1809_v38 }
 0x273   :  { %1810 = vrcp.f32 %v657_v39  ;;  %v669_v45 = vand.u32 2147483648, %v657_v39  ;;  %v667_v54 = vand.u32 2147483647, %v657_v39  ;;  %vm663_vm9 = vweird.f32 %v657_v39 }
 0x275   :  { %v670_v56 = vor.u32 1.1754944e-38, %v669_v45  ;;  %vm668_vm11 = vcmp.eq.f32.partialorder %v667_v54, 8.507059e+37 }
 0x279   :  { %v1811_v40 = vpop.eup %1810 }
 0x27a   :  { %v659_v42 = vmul.f32 %v1811_v40, %v657_v39  ;;  %vm664_vm8 = vweird.f32 %v1811_v40 }
 0x27b   :  { %vm665_vm10 = vmor %vm663_vm9, %vm664_vm8 }
 0x27c   :  { %v660_v44 = vsub.f32 1.0, %v659_v42 }
 0x27e   :  { %v661_v46 = vmul.f32 %v1811_v40, %v660_v44 }
 0x280   :  { %v662_v55 = vadd.f32 %v1811_v40, %v661_v46 }
 0x282   :  { %v666_v61 = vsel %vm665_vm10, %v1811_v40, %v662_v55 }
 0x283   :  { %v671_v62 = vsel %vm668_vm11, %v670_v56, %v666_v61 }
 0x284   :  { %v673_v1 = vmul.f32 %v671_v62, %v645_v58  ;;  %v680_v4 = vrot.slane %v671_v62, 1  ;;  %v713_v62 = vld [vmem:[#allocation2 + $0x2] ss:$8 sm:$0x7] }
 0x286   :  { %v677_v3 = vadd.f32 %v675_v63, %v673_v1  ;;  %v682_v49 = vsub.f32 1.0, %v680_v4  ;;  %v684_v10 = vmul.f32 %v680_v4, %v2312_v12 }
 0x288   :  { %1812 = vtanh.f32 %v677_v3 }
 0x28e   :  { %v1813_v5 = vpop.eup %1812 }
 0x28f   :  { %v683_v7 = vmul.f32 %v1813_v5, %v682_v49 }
 0x291   :  { %v685_v11 = vadd.f32 %v684_v10, %v683_v7 }
 0x293   :  { %v686_v16 = vmul.f32 %v685_v11, %v685_v11 }
 0x295   :  { %v687_v18 = vsel %vm545_vm0, %v686_v16, 0.0 }
 0x296   :  { %688 = vadd.xlane.f32.xlu0 %v687_v18 }
 0x309   :  { %v689_v22 = vpop.xlane.xlu0 %688 }
 0x30a   :  { %v690_v17 = vrot.slane %v689_v22, 4 }
 0x30c   :  { %v691_v23 = vadd.f32 %v690_v17, %v689_v22 }
 0x30e   :  { %v692_v25 = vrot.slane %v691_v23, 2 }
 0x310   :  { %v693_v26 = vadd.f32 %v692_v25, %v691_v23 }
 0x312   :  { %v694_v29 = vrot.slane %v693_v26, 1 }
 0x314   :  { %v695_v30 = vadd.f32 %v694_v29, %v693_v26 }
 0x316   :  { %1773 = vpush %v695_v30 }
 0x347   :  { %s1774_s18 = spop %1773 }
 0x348   :  { %v697_v31 = vstv %s1774_s18 }
 0x349   :  { %v698_v32 = vadd.f32 1e-30, %v697_v31 }
 0x34b   :  { %1814 = vrsqrt.f32 %v698_v32  ;;  %vm705_vm13 = vweird.f32 %v698_v32 }
 0x351   :  { %v1815_v33 = vpop.eup %1814 }
 0x352   :  { %v700_v34 = vmul.f32 %v1815_v33, %v698_v32  ;;  %vm706_vm12 = vweird.f32 %v1815_v33  ;;  %v780_v32 = vrot.slane %v713_v62, 2 }
 0x353   :  { %vm707_vm14 = vmor %vm705_vm13, %vm706_vm12 }
 0x354   :  { %v701_v12 = vmul.f32 %v1815_v33, %v700_v34 }
 0x356   :  { %v702_v37 = vmul.f32 0.5, %v701_v12 }
 0x358   :  { %v703_v38 = vsub.f32 1.5, %v702_v37 }
 0x35a   :  { %v704_v39 = vmul.f32 %v1815_v33, %v703_v38 }
 0x35c   :  { %v708_v40 = vsel %vm707_vm14, %v1815_v33, %v704_v39 }
 0x35d   :  { %v2347_v42 = vmul.f32 %v708_v40, %v685_v11 }
 0x35f   :  { %710 = vst [vmem:[#allocation15 + $0x1] sm:$0x1] %v2347_v42  ;;  %v711_v44 = vpack.c.bf16 %v2347_v42, %v2347_v42 }
 0x361   :  { %722 = vmatmul.bf16.vlgmr.msra.gmra.mxu1 %v711_v44  ;;  %735 = vmatmul.bf16.vlgmr.msra.gmra.mxu2 %v711_v44 }
 0x362   :  { %748 = vmatmul.bf16.vlgmr.msra.gmra.mxu3 %v711_v44  ;;  %950 = vmatpush.bf16.msra.mxu1 %v2177_v43 }
 0x363   :  { %1029 = vmatpush.bf16.msra.mxu2 %v2152_v28  ;;  %1042 = vmatpush.bf16.msra.mxu3 %v2169_v27 }
 0x366   :  { %951 = vmatpush.bf16.msra.mxu1 %v2189_v52 }
 0x367   :  { %1030 = vmatpush.bf16.msra.mxu2 %v2155_v35  ;;  %1043 = vmatpush.bf16.msra.mxu3 %v2175_v41 }
 0x36a   :  { %952 = vmatpush.bf16.msra.mxu1 %v2202_v60 }
 0x36b   :  { %1031 = vmatpush.bf16.msra.mxu2 %v2158_v47  ;;  %1044 = vmatpush.bf16.msra.mxu3 %v2186_v50 }
 0x36e   :  { %953 = vmatpush.bf16.msra.mxu1 %v2211_v2 }
 0x36f   :  { %1032 = vmatpush.bf16.msra.mxu2 %v2161_v59  ;;  %1045 = vmatpush.bf16.msra.mxu3 %v2199_v57 }
 0x372   :  { %954 = vmatpush.bf16.msra.mxu1 %v2219_v9 }
 0x373   :  { %1033 = vmatpush.bf16.msra.mxu2 %v2164_v8  ;;  %1046 = vmatpush.bf16.msra.mxu3 %v2208_v0 }
 0x376   :  { %955 = vmatpush.bf16.msra.mxu1 %v2227_v15 }
 0x377   :  { %1034 = vmatpush.bf16.msra.mxu2 %v2167_v21  ;;  %1047 = vmatpush.bf16.msra.mxu3 %v2216_v6 }
 0x37a   :  { %956 = vmatpush.bf16.msra.mxu1 %v2235_v20 }
 0x37b   :  { %1035 = vmatpush.bf16.msra.mxu2 %v2172_v36  ;;  %1048 = vmatpush.bf16.msra.mxu3 %v2224_v13 }
 0x37e   :  { %957 = vmatpush.bf16.msra.mxu1 %v2241_v24 }
 0x37f   :  { %1036 = vmatpush.bf16.msra.mxu2 %v2181_v48  ;;  %1049 = vmatpush.bf16.msra.mxu3 %v2232_v19 }
 0x3de   :  { %v723_v45 = vpop.f32.mrf.mxu1 }
 0x3df   :  { %v724_v58 = vadd.f32 %v723_v45, %v2300_v51 }
 0x3e4   :  { %v736_v46 = vpop.f32.mrf.mxu2 }
 0x3e5   :  { %v737_v54 = vadd.f32 %v736_v46, %v2302_v53  ;;  %v749_v55 = vpop.f32.mrf.mxu3 }
 0x3e6   :  { %v725_v56 = vpop.f32.mrf.mxu1  ;;  %v750_v26 = vadd.f32 %v749_v55, %v2307_v14 }
 0x3e7   :  { %v755_v61 = vrot.slane %v737_v54, 7 }
 0x3e9   :  { %v756_v63 = vsel %vm545_vm0, %v724_v58, %v755_v61 }
 0x3ea   :  { %v758_v1 = vadd.f32 %v756_v63, %v713_v62 }
 0x3ec   :  { %v1677_v3 = vmul.f32 -1.442695, %v758_v1  ;;  %v738_v4 = vpop.f32.mrf.mxu2 }
 0x3ed   :  { %v751_v49 = vpop.f32.mrf.mxu3 }
 0x3ee   :  { %1816 = vpow2.f32 %v1677_v3 }
 0x3f4   :  { %v1817_v5 = vpop.eup %1816 }
 0x3f5   :  { %v762_v7 = vadd.f32 1.0, %v1817_v5 }
 0x3f7   :  { %1818 = vrcp.f32 %v762_v7  ;;  %v774_v18 = vand.u32 2147483648, %v762_v7  ;;  %v772_v17 = vand.u32 2147483647, %v762_v7  ;;  %vm768_vm1 = vweird.f32 %v762_v7 }
 0x3f9   :  { %v775_v25 = vor.u32 1.1754944e-38, %v774_v18  ;;  %vm773_vm3 = vcmp.eq.f32.partialorder %v772_v17, 8.507059e+37 }
 0x3fd   :  { %v1819_v10 = vpop.eup %1818 }
 0x3fe   :  { %v764_v11 = vmul.f32 %v1819_v10, %v762_v7  ;;  %vm769_vm15 = vweird.f32 %v1819_v10 }
 0x3ff   :  { %vm770_vm2 = vmor %vm768_vm1, %vm769_vm15 }
 0x400   :  { %v765_v16 = vsub.f32 1.0, %v764_v11 }
 0x402   :  { %v766_v22 = vmul.f32 %v1819_v10, %v765_v16 }
 0x404   :  { %v767_v23 = vadd.f32 %v1819_v10, %v766_v22 }
 0x406   :  { %v771_v29 = vsel %vm770_vm2, %v1819_v10, %v767_v23 }
 0x407   :  { %v776_v30 = vsel %vm773_vm3, %v775_v25, %v771_v29 }
 0x408   :  { %v778_v31 = vmul.f32 %v776_v30, %v750_v26  ;;  %v785_v34 = vrot.slane %v776_v30, 1  ;;  %v818_v26 = vld [vmem:[#allocation2 + $0x3] ss:$8 sm:$0x7] }
 0x40a   :  { %v782_v33 = vadd.f32 %v780_v32, %v778_v31  ;;  %v787_v12 = vsub.f32 1.0, %v785_v34  ;;  %v789_v39 = vmul.f32 %v785_v34, %v2347_v42 }
 0x40c   :  { %1820 = vtanh.f32 %v782_v33 }
 0x412   :  { %v1821_v37 = vpop.eup %1820 }
 0x413   :  { %v788_v38 = vmul.f32 %v1821_v37, %v787_v12 }
 0x415   :  { %v790_v40 = vadd.f32 %v789_v39, %v788_v38 }
 0x417   :  { %v791_v44 = vmul.f32 %v790_v40, %v790_v40 }
 0x419   :  { %v792_v45 = vsel %vm545_vm0, %v791_v44, 0.0 }
 0x41a   :  { %793 = vadd.xlane.f32.xlu1 %v792_v45 }
 0x48d   :  { %v794_v46 = vpop.xlane.xlu1 %793 }
 0x48e   :  { %v795_v54 = vrot.slane %v794_v46, 4 }
 0x490   :  { %v796_v55 = vadd.f32 %v795_v54, %v794_v46 }
 0x492   :  { %v797_v56 = vrot.slane %v796_v55, 2 }
 0x494   :  { %v798_v58 = vadd.f32 %v797_v56, %v796_v55 }
 0x496   :  { %v799_v61 = vrot.slane %v798_v58, 1 }
 0x498   :  { %v800_v62 = vadd.f32 %v799_v61, %v798_v58 }
 0x49a   :  { %1775 = vpush %v800_v62 }
 0x4cb   :  { %s1776_s19 = spop %1775 }
 0x4cc   :  { %v802_v63 = vstv %s1776_s19 }
 0x4cd   :  { %v803_v1 = vadd.f32 1e-30, %v802_v63 }
 0x4cf   :  { %1822 = vrsqrt.f32 %v803_v1  ;;  %vm810_vm5 = vweird.f32 %v803_v1 }
 0x4d5   :  { %v1823_v3 = vpop.eup %1822 }
 0x4d6   :  { %v805_v4 = vmul.f32 %v1823_v3, %v803_v1  ;;  %vm811_vm4 = vweird.f32 %v1823_v3  ;;  %v885_v1 = vrot.slane %v818_v26, 2 }
 0x4d7   :  { %vm812_vm6 = vmor %vm810_vm5, %vm811_vm4 }
 0x4d8   :  { %v806_v42 = vmul.f32 %v1823_v3, %v805_v4 }
 0x4da   :  { %v807_v49 = vmul.f32 0.5, %v806_v42 }
 0x4dc   :  { %v808_v5 = vsub.f32 1.5, %v807_v49 }
 0x4de   :  { %v809_v7 = vmul.f32 %v1823_v3, %v808_v5 }
 0x4e0   :  { %v813_v10 = vsel %vm812_vm6, %v1823_v3, %v809_v7 }
 0x4e1   :  { %v2382_v11 = vmul.f32 %v813_v10, %v790_v40 }
 0x4e3   :  { %815 = vst [vmem:[#allocation15 + $0x2] sm:$0x1] %v2382_v11  ;;  %v816_v16 = vpack.c.bf16 %v2382_v11, %v2382_v11 }
 0x4e5   :  { %827 = vmatmul.bf16.vlgmr.msrb.gmra.mxu0 %v816_v16  ;;  %840 = vmatmul.bf16.vlgmr.msrb.gmra.mxu1 %v816_v16 }
 0x4e6   :  { %853 = vmatmul.bf16.vlgmr.msrb.gmra.mxu2 %v816_v16  ;;  %1055 = vmatpush.bf16.msrb.mxu0 %v2177_v43 }
 0x4e7   :  { %1134 = vmatpush.bf16.msrb.mxu1 %v2152_v28  ;;  %1147 = vmatpush.bf16.msrb.mxu2 %v2169_v27 }
 0x4ea   :  { %1056 = vmatpush.bf16.msrb.mxu0 %v2189_v52 }
 0x4eb   :  { %1135 = vmatpush.bf16.msrb.mxu1 %v2155_v35  ;;  %1148 = vmatpush.bf16.msrb.mxu2 %v2175_v41 }
 0x4ee   :  { %1057 = vmatpush.bf16.msrb.mxu0 %v2202_v60 }
 0x4ef   :  { %1136 = vmatpush.bf16.msrb.mxu1 %v2158_v47  ;;  %1149 = vmatpush.bf16.msrb.mxu2 %v2186_v50 }
 0x4f2   :  { %1058 = vmatpush.bf16.msrb.mxu0 %v2211_v2 }
 0x4f3   :  { %1137 = vmatpush.bf16.msrb.mxu1 %v2161_v59  ;;  %1150 = vmatpush.bf16.msrb.mxu2 %v2199_v57 }
 0x4f6   :  { %1059 = vmatpush.bf16.msrb.mxu0 %v2219_v9 }
 0x4f7   :  { %1138 = vmatpush.bf16.msrb.mxu1 %v2164_v8  ;;  %1151 = vmatpush.bf16.msrb.mxu2 %v2208_v0 }
 0x4fa   :  { %1060 = vmatpush.bf16.msrb.mxu0 %v2227_v15 }
 0x4fb   :  { %1139 = vmatpush.bf16.msrb.mxu1 %v2167_v21  ;;  %1152 = vmatpush.bf16.msrb.mxu2 %v2216_v6 }
 0x4fe   :  { %1061 = vmatpush.bf16.msrb.mxu0 %v2235_v20 }
 0x4ff   :  { %1140 = vmatpush.bf16.msrb.mxu1 %v2172_v36  ;;  %1153 = vmatpush.bf16.msrb.mxu2 %v2224_v13 }
 0x502   :  { %1062 = vmatpush.bf16.msrb.mxu0 %v2241_v24 }
 0x503   :  { %1141 = vmatpush.bf16.msrb.mxu1 %v2181_v48  ;;  %1154 = vmatpush.bf16.msrb.mxu2 %v2232_v19 }
 0x562   :  { %v828_v18 = vpop.f32.mrf.mxu0  ;;  %v841_v22 = vpop.f32.mrf.mxu1 }
 0x563   :  { %v842_v17 = vadd.f32 %v841_v22, %v2302_v53  ;;  %v829_v23 = vadd.f32 %v828_v18, %v2300_v51 }
 0x565   :  { %v860_v25 = vrot.slane %v842_v17, 7 }
 0x567   :  { %v861_v29 = vsel %vm545_vm0, %v829_v23, %v860_v25 }
 0x568   :  { %v863_v30 = vadd.f32 %v861_v29, %v818_v26 }
 0x569   :  { %v854_v31 = vpop.f32.mrf.mxu2 }
 0x56a   :  { %v1678_v32 = vmul.f32 -1.442695, %v863_v30  ;;  %v830_v33 = vpop.f32.mrf.mxu0  ;;  %v843_v34 = vpop.f32.mrf.mxu1  ;;  %v855_v58 = vadd.f32 %v854_v31, %v2307_v14 }
 0x56c   :  { %1824 = vpow2.f32 %v1678_v32 }
 0x571   :  { %v856_v12 = vpop.f32.mrf.mxu2 }
 0x572   :  { %v1825_v37 = vpop.eup %1824 }
 0x573   :  { %v867_v38 = vadd.f32 1.0, %v1825_v37 }
 0x575   :  { %1826 = vrcp.f32 %v867_v38  ;;  %v879_v45 = vand.u32 2147483648, %v867_v38  ;;  %v877_v54 = vand.u32 2147483647, %v867_v38  ;;  %vm873_vm8 = vweird.f32 %v867_v38 }
 0x577   :  { %v880_v56 = vor.u32 1.1754944e-38, %v879_v45  ;;  %vm878_vm10 = vcmp.eq.f32.partialorder %v877_v54, 8.507059e+37 }
 0x57b   :  { %v1827_v39 = vpop.eup %1826 }
 0x57c   :  { %v869_v40 = vmul.f32 %v1827_v39, %v867_v38  ;;  %vm874_vm7 = vweird.f32 %v1827_v39 }
 0x57d   :  { %vm875_vm9 = vmor %vm873_vm8, %vm874_vm7 }
 0x57e   :  { %v870_v44 = vsub.f32 1.0, %v869_v40 }
 0x580   :  { %v871_v46 = vmul.f32 %v1827_v39, %v870_v44 }
 0x582   :  { %v872_v55 = vadd.f32 %v1827_v39, %v871_v46 }
 0x584   :  { %v876_v61 = vsel %vm875_vm9, %v1827_v39, %v872_v55 }
 0x585   :  { %v881_v62 = vsel %vm878_vm10, %v880_v56, %v876_v61 }
 0x586   :  { %v883_v63 = vmul.f32 %v881_v62, %v855_v58  ;;  %v890_v4 = vrot.slane %v881_v62, 1 }
 0x588   :  { %v887_v3 = vadd.f32 %v885_v1, %v883_v63  ;;  %v892_v42 = vsub.f32 1.0, %v890_v4  ;;  %v894_v7 = vmul.f32 %v890_v4, %v2382_v11 }
 0x58a   :  { %1828 = vtanh.f32 %v887_v3 }
 0x590   :  { %v1829_v49 = vpop.eup %1828 }
 0x591   :  { %v893_v5 = vmul.f32 %v1829_v49, %v892_v42 }
 0x593   :  { %v895_v10 = vadd.f32 %v894_v7, %v893_v5 }
 0x595   :  { %v896_v16 = vmul.f32 %v895_v10, %v895_v10 }
 0x597   :  { %v897_v18 = vsel %vm545_vm0, %v896_v16, 0.0 }
 0x598   :  { %898 = vadd.xlane.f32.xlu1 %v897_v18 }
 0x60b   :  { %v899_v22 = vpop.xlane.xlu1 %898 }
 0x60c   :  { %v900_v17 = vrot.slane %v899_v22, 4 }
 0x60e   :  { %v901_v23 = vadd.f32 %v900_v17, %v899_v22 }
 0x610   :  { %v902_v25 = vrot.slane %v901_v23, 2 }
 0x612   :  { %v903_v29 = vadd.f32 %v902_v25, %v901_v23 }
 0x614   :  { %v904_v30 = vrot.slane %v903_v29, 1 }
 0x616   :  { %v905_v26 = vadd.f32 %v904_v30, %v903_v29 }
 0x618   :  { %1777 = vpush %v905_v26 }
 0x649   :  { %s1778_s20 = spop %1777 }
 0x64a   :  { %v907_v31 = vstv %s1778_s20 }
 0x64b   :  { %v908_v32 = vadd.f32 1e-30, %v907_v31 }
 0x64d   :  { %1830 = vrsqrt.f32 %v908_v32  ;;  %vm915_vm12 = vweird.f32 %v908_v32 }
 0x653   :  { %v1831_v33 = vpop.eup %1830 }
 0x654   :  { %v910_v34 = vmul.f32 %v1831_v33, %v908_v32  ;;  %vm916_vm11 = vweird.f32 %v1831_v33 }
 0x655   :  { %vm917_vm13 = vmor %vm915_vm12, %vm916_vm11 }
 0x656   :  { %v911_v11 = vmul.f32 %v1831_v33, %v910_v34 }
 0x658   :  { %v912_v12 = vmul.f32 0.5, %v911_v11 }
 0x65a   :  { %v913_v37 = vsub.f32 1.5, %v912_v12 }
 0x65c   :  { %v914_v38 = vmul.f32 %v1831_v33, %v913_v37 }
 0x65e   :  { %v918_v39 = vsel %vm917_vm13, %v1831_v33, %v914_v38 }
 0x65f   :  { %v2417_v40 = vmul.f32 %v918_v39, %v895_v10 }
 0x661   :  { %920 = vst [vmem:[#allocation15 + $0x3] sm:$0x1] %v2417_v40  ;;  %v921_v44 = vpack.c.bf16 %v2417_v40, %v2417_v40 }
 0x663   :  { %932 = vmatmul.bf16.vlgmr.msrb.gmra.mxu3 %v921_v44  ;;  %945 = vmatmul.bf16.vlgmr.msra.gmra.mxu0 %v921_v44 }
 0x664   :  { %958 = vmatmul.bf16.vlgmr.msra.gmra.mxu1 %v921_v44  ;;  %1160 = vmatpush.bf16.msrb.mxu3 %v2177_v43 }
 0x665   :  { %1239 = vmatpush.bf16.msra.mxu0 %v2152_v28  ;;  %1252 = vmatpush.bf16.msra.mxu1 %v2169_v27 }
 0x668   :  { %1161 = vmatpush.bf16.msrb.mxu3 %v2189_v52 }
 0x669   :  { %1240 = vmatpush.bf16.msra.mxu0 %v2155_v35  ;;  %1253 = vmatpush.bf16.msra.mxu1 %v2175_v41  ;;  %v923_v41 = vld [vmem:[#allocation2 + $0x4] ss:$8 sm:$0x7] }
 0x66a   :  { %v990_v3 = vrot.slane %v923_v41, 2 }
 0x66c   :  { %1162 = vmatpush.bf16.msrb.mxu3 %v2202_v60 }
 0x66d   :  { %1241 = vmatpush.bf16.msra.mxu0 %v2158_v47  ;;  %1254 = vmatpush.bf16.msra.mxu1 %v2186_v50 }
 0x670   :  { %1163 = vmatpush.bf16.msrb.mxu3 %v2211_v2 }
 0x671   :  { %1242 = vmatpush.bf16.msra.mxu0 %v2161_v59  ;;  %1255 = vmatpush.bf16.msra.mxu1 %v2199_v57 }
 0x674   :  { %1164 = vmatpush.bf16.msrb.mxu3 %v2219_v9 }
 0x675   :  { %1243 = vmatpush.bf16.msra.mxu0 %v2164_v8  ;;  %1256 = vmatpush.bf16.msra.mxu1 %v2208_v0 }
 0x678   :  { %1165 = vmatpush.bf16.msrb.mxu3 %v2227_v15 }
 0x679   :  { %1244 = vmatpush.bf16.msra.mxu0 %v2167_v21  ;;  %1257 = vmatpush.bf16.msra.mxu1 %v2216_v6 }
 0x67c   :  { %1166 = vmatpush.bf16.msrb.mxu3 %v2235_v20 }
 0x67d   :  { %1245 = vmatpush.bf16.msra.mxu0 %v2172_v36  ;;  %1258 = vmatpush.bf16.msra.mxu1 %v2224_v13 }
 0x680   :  { %1167 = vmatpush.bf16.msrb.mxu3 %v2241_v24 }
 0x681   :  { %1246 = vmatpush.bf16.msra.mxu0 %v2181_v48  ;;  %1259 = vmatpush.bf16.msra.mxu1 %v2232_v19 }
 0x6e0   :  { %v946_v28 = vpop.f32.mrf.mxu0 }
 0x6e1   :  { %v959_v35 = vpop.f32.mrf.mxu1  ;;  %v947_v47 = vadd.f32 %v946_v28, %v2302_v53 }
 0x6e2   :  { %v960_v62 = vadd.f32 %v959_v35, %v2307_v14 }
 0x6e3   :  { %v965_v8 = vrot.slane %v947_v47, 7 }
 0x6e6   :  { %v933_v59 = vpop.f32.mrf.mxu3 }
 0x6e7   :  { %v934_v21 = vadd.f32 %v933_v59, %v2300_v51 }
 0x6e8   :  { %v948_v27 = vpop.f32.mrf.mxu0 }
 0x6e9   :  { %v966_v36 = vsel %vm545_vm0, %v934_v21, %v965_v8  ;;  %v961_v50 = vpop.f32.mrf.mxu1 }
 0x6ea   :  { %v968_v57 = vadd.f32 %v966_v36, %v923_v41 }
 0x6ec   :  { %v1679_v0 = vmul.f32 -1.442695, %v968_v57 }
 0x6ee   :  { %1832 = vpow2.f32 %v1679_v0  ;;  %v935_v6 = vpop.f32.mrf.mxu3 }
 0x6f4   :  { %v1833_v48 = vpop.eup %1832 }
 0x6f5   :  { %v972_v13 = vadd.f32 1.0, %v1833_v48 }
 0x6f7   :  { %1834 = vrcp.f32 %v972_v13  ;;  %v984_v54 = vand.u32 2147483648, %v972_v13  ;;  %v982_v56 = vand.u32 2147483647, %v972_v13  ;;  %vm978_vm15 = vweird.f32 %v972_v13 }
 0x6f9   :  { %v985_v61 = vor.u32 1.1754944e-38, %v984_v54  ;;  %vm983_vm2 = vcmp.eq.f32.partialorder %v982_v56, 8.507059e+37 }
 0x6fd   :  { %v1835_v19 = vpop.eup %1834 }
 0x6fe   :  { %v974_v45 = vmul.f32 %v1835_v19, %v972_v13  ;;  %vm979_vm14 = vweird.f32 %v1835_v19 }
 0x6ff   :  { %vm980_vm1 = vmor %vm978_vm15, %vm979_vm14 }
 0x700   :  { %v975_v46 = vsub.f32 1.0, %v974_v45 }
 0x702   :  { %v976_v55 = vmul.f32 %v1835_v19, %v975_v46 }
 0x704   :  { %v977_v58 = vadd.f32 %v1835_v19, %v976_v55 }
 0x706   :  { %v981_v63 = vsel %vm980_vm1, %v1835_v19, %v977_v58 }
 0x707   :  { %v986_v1 = vsel %vm983_vm2, %v985_v61, %v981_v63 }
 0x708   :  { %v988_v4 = vmul.f32 %v986_v1, %v960_v62  ;;  %v995_v49 = vrot.slane %v986_v1, 1 }
 0x70a   :  { %v992_v42 = vadd.f32 %v990_v3, %v988_v4  ;;  %v997_v5 = vsub.f32 1.0, %v995_v49  ;;  %v999_v16 = vmul.f32 %v995_v49, %v2417_v40 }
 0x70c   :  { %1836 = vtanh.f32 %v992_v42 }
 0x712   :  { %v1837_v7 = vpop.eup %1836 }
 0x713   :  { %v998_v10 = vmul.f32 %v1837_v7, %v997_v5 }
 0x715   :  { %v1000_v18 = vadd.f32 %v999_v16, %v998_v10 }
 0x717   :  { %v1001_v22 = vmul.f32 %v1000_v18, %v1000_v18 }
 0x719   :  { %v1002_v17 = vsel %vm545_vm0, %v1001_v22, 0.0 }
 0x71a   :  { %1003 = vadd.xlane.f32.xlu2 %v1002_v17 }
 0x78d   :  { %v1004_v23 = vpop.xlane.xlu2 %1003 }
 0x78e   :  { %v1005_v25 = vrot.slane %v1004_v23, 4 }
 0x790   :  { %v1006_v29 = vadd.f32 %v1005_v25, %v1004_v23 }
 0x792   :  { %v1007_v30 = vrot.slane %v1006_v29, 2 }
 0x794   :  { %v1008_v26 = vadd.f32 %v1007_v30, %v1006_v29 }
 0x796   :  { %v1009_v31 = vrot.slane %v1008_v26, 1 }
 0x798   :  { %v1010_v32 = vadd.f32 %v1009_v31, %v1008_v26 }
 0x79a   :  { %1779 = vpush %v1010_v32 }
 0x7cb   :  { %s1780_s21 = spop %1779 }
 0x7cc   :  { %v1012_v33 = vstv %s1780_s21 }
 0x7cd   :  { %v1013_v34 = vadd.f32 1e-30, %v1012_v33 }
 0x7cf   :  { %1838 = vrsqrt.f32 %v1013_v34  ;;  %vm1020_vm4 = vweird.f32 %v1013_v34 }
 0x7d5   :  { %v1839_v11 = vpop.eup %1838 }
 0x7d6   :  { %v1015_v12 = vmul.f32 %v1839_v11, %v1013_v34  ;;  %vm1021_vm3 = vweird.f32 %v1839_v11 }
 0x7d7   :  { %vm1022_vm5 = vmor %vm1020_vm4, %vm1021_vm3 }
 0x7d8   :  { %v1016_v37 = vmul.f32 %v1839_v11, %v1015_v12 }
 0x7da   :  { %v1017_v38 = vmul.f32 0.5, %v1016_v37 }
 0x7dc   :  { %v1018_v39 = vsub.f32 1.5, %v1017_v38 }
 0x7de   :  { %v1019_v40 = vmul.f32 %v1839_v11, %v1018_v39 }
 0x7e0   :  { %v1023_v44 = vsel %vm1022_vm5, %v1839_v11, %v1019_v40 }
 0x7e1   :  { %v1024_v28 = vmul.f32 %v1023_v44, %v1000_v18 }
 0x7e3   :  { %1025 = vst [vmem:[#allocation15 + $0x4] sm:$0x1] %v1024_v28  ;;  %v1026_v35 = vpack.c.bf16 %v1024_v28, %v1024_v28 }
 0x7e5   :  { %1037 = vmatmul.bf16.vlgmr.msra.gmra.mxu2 %v1026_v35  ;;  %1050 = vmatmul.bf16.vlgmr.msra.gmra.mxu3 %v1026_v35 }
 0x7e6   :  { %1063 = vmatmul.bf16.vlgmr.msrb.gmra.mxu0 %v1026_v35  ;;  %1265 = vmatpush.bf16.msra.mxu2 %v2177_v43 }
 0x7ea   :  { %1266 = vmatpush.bf16.msra.mxu2 %v2189_v52 }
 0x7ee   :  { %1267 = vmatpush.bf16.msra.mxu2 %v2202_v60  ;;  %v1028_v60 = vld [vmem:[#allocation2 + $0x5] ss:$8 sm:$0x7] }
 0x7ef   :  { %v1095_v56 = vrot.slane %v1028_v60, 2 }
 0x7f2   :  { %1268 = vmatpush.bf16.msra.mxu2 %v2211_v2 }
 0x7f6   :  { %1269 = vmatpush.bf16.msra.mxu2 %v2219_v9 }
 0x7fa   :  { %1270 = vmatpush.bf16.msra.mxu2 %v2227_v15 }
 0x7fe   :  { %1271 = vmatpush.bf16.msra.mxu2 %v2235_v20 }
 0x802   :  { %1272 = vmatpush.bf16.msra.mxu2 %v2241_v24 }
 0x863   :  { %v1064_v47 = vpop.f32.mrf.mxu0 }
 0x864   :  { %v1065_v46 = vadd.f32 %v1064_v47, %v2307_v14 }
 0x868   :  { %v1038_v59 = vpop.f32.mrf.mxu2  ;;  %v1051_v8 = vpop.f32.mrf.mxu3 }
 0x869   :  { %v1052_v21 = vadd.f32 %v1051_v8, %v2302_v53  ;;  %v1039_v43 = vadd.f32 %v1038_v59, %v2300_v51  ;;  %v1133_v59 = vld [vmem:[#allocation2 + $0x6] ss:$8 sm:$0x7] }
 0x86b   :  { %v1070_v52 = vrot.slane %v1052_v21, 7  ;;  %v1066_v27 = vpop.f32.mrf.mxu0 }
 0x86d   :  { %v1071_v2 = vsel %vm545_vm0, %v1039_v43, %v1070_v52 }
 0x86e   :  { %v1073_v41 = vadd.f32 %v1071_v2, %v1028_v60 }
 0x870   :  { %v1680_v9 = vmul.f32 -1.442695, %v1073_v41  ;;  %v1040_v36 = vpop.f32.mrf.mxu2  ;;  %v1053_v15 = vpop.f32.mrf.mxu3 }
 0x872   :  { %1840 = vpow2.f32 %v1680_v9 }
 0x878   :  { %v1841_v20 = vpop.eup %1840 }
 0x879   :  { %v1077_v50 = vadd.f32 1.0, %v1841_v20 }
 0x87b   :  { %1842 = vrcp.f32 %v1077_v50  ;;  %v1089_v6 = vand.u32 2147483648, %v1077_v50  ;;  %v1087_v13 = vand.u32 2147483647, %v1077_v50  ;;  %vm1083_vm7 = vweird.f32 %v1077_v50 }
 0x87d   :  { %v1090_v45 = vor.u32 1.1754944e-38, %v1089_v6  ;;  %vm1088_vm9 = vcmp.eq.f32.partialorder %v1087_v13, 8.507059e+37 }
 0x881   :  { %v1843_v24 = vpop.eup %1842 }
 0x882   :  { %v1079_v57 = vmul.f32 %v1843_v24, %v1077_v50  ;;  %vm1084_vm6 = vweird.f32 %v1843_v24 }
 0x883   :  { %vm1085_vm8 = vmor %vm1083_vm7, %vm1084_vm6 }
 0x884   :  { %v1080_v0 = vsub.f32 1.0, %v1079_v57 }
 0x886   :  { %v1081_v48 = vmul.f32 %v1843_v24, %v1080_v0 }
 0x888   :  { %v1082_v19 = vadd.f32 %v1843_v24, %v1081_v48 }
 0x88a   :  { %v1086_v54 = vsel %vm1085_vm8, %v1843_v24, %v1082_v19  ;;  %v1200_v19 = vrot.slane %v1133_v59, 2 }
 0x88b   :  { %v1091_v55 = vsel %vm1088_vm9, %v1090_v45, %v1086_v54 }
 0x88c   :  { %v1093_v58 = vmul.f32 %v1091_v55, %v1065_v46  ;;  %v1100_v62 = vrot.slane %v1091_v55, 1 }
 0x88e   :  { %v1097_v61 = vadd.f32 %v1095_v56, %v1093_v58  ;;  %v1102_v63 = vsub.f32 1.0, %v1100_v62  ;;  %v1104_v4 = vmul.f32 %v1100_v62, %v1024_v28 }
 0x890   :  { %1844 = vtanh.f32 %v1097_v61 }
 0x896   :  { %v1845_v1 = vpop.eup %1844 }
 0x897   :  { %v1103_v3 = vmul.f32 %v1845_v1, %v1102_v63 }
 0x899   :  { %v1105_v42 = vadd.f32 %v1104_v4, %v1103_v3 }
 0x89b   :  { %v1106_v49 = vmul.f32 %v1105_v42, %v1105_v42 }
 0x89d   :  { %v1107_v5 = vsel %vm545_vm0, %v1106_v49, 0.0 }
 0x89e   :  { %1108 = vadd.xlane.f32.xlu2 %v1107_v5 }
 0x911   :  { %v1109_v7 = vpop.xlane.xlu2 %1108 }
 0x912   :  { %v1110_v10 = vrot.slane %v1109_v7, 4 }
 0x914   :  { %v1111_v16 = vadd.f32 %v1110_v10, %v1109_v7 }
 0x916   :  { %v1112_v18 = vrot.slane %v1111_v16, 2 }
 0x918   :  { %v1113_v22 = vadd.f32 %v1112_v18, %v1111_v16 }
 0x91a   :  { %v1114_v17 = vrot.slane %v1113_v22, 1 }
 0x91c   :  { %v1115_v23 = vadd.f32 %v1114_v17, %v1113_v22 }
 0x91e   :  { %1781 = vpush %v1115_v23 }
 0x94f   :  { %s1782_s1 = spop %1781 }
 0x950   :  { %v1117_v25 = vstv %s1782_s1 }
 0x951   :  { %v1118_v29 = vadd.f32 1e-30, %v1117_v25 }
 0x953   :  { %1846 = vrsqrt.f32 %v1118_v29  ;;  %vm1125_vm11 = vweird.f32 %v1118_v29 }
 0x959   :  { %v1847_v30 = vpop.eup %1846 }
 0x95a   :  { %v1120_v26 = vmul.f32 %v1847_v30, %v1118_v29  ;;  %vm1126_vm10 = vweird.f32 %v1847_v30 }
 0x95b   :  { %vm1127_vm12 = vmor %vm1125_vm11, %vm1126_vm10 }
 0x95c   :  { %v1121_v31 = vmul.f32 %v1847_v30, %v1120_v26 }
 0x95e   :  { %v1122_v32 = vmul.f32 0.5, %v1121_v31 }
 0x960   :  { %v1123_v33 = vsub.f32 1.5, %v1122_v32 }
 0x962   :  { %v1124_v34 = vmul.f32 %v1847_v30, %v1123_v33 }
 0x964   :  { %v1128_v11 = vsel %vm1127_vm12, %v1847_v30, %v1124_v34 }
 0x965   :  { %v1129_v12 = vmul.f32 %v1128_v11, %v1105_v42 }
 0x967   :  { %1130 = vst [vmem:[#allocation15 + $0x5] sm:$0x1] %v1129_v12  ;;  %v1131_v37 = vpack.c.bf16 %v1129_v12, %v1129_v12 }
 0x969   :  { %1142 = vmatmul.bf16.vlgmr.msrb.gmra.mxu1 %v1131_v37  ;;  %1155 = vmatmul.bf16.vlgmr.msrb.gmra.mxu2 %v1131_v37 }
 0x96a   :  { %1168 = vmatmul.bf16.vlgmr.msrb.gmra.mxu3 %v1131_v37  ;;  %v1238_v37 = vld [vmem:[#allocation2 + $0x7] ss:$8 sm:$0x7] }
 0x9e6   :  { %v1143_v38 = vpop.f32.mrf.mxu1 }
 0x9e7   :  { %v1144_v35 = vadd.f32 %v1143_v38, %v2300_v51 }
 0x9ec   :  { %v1156_v39 = vpop.f32.mrf.mxu2 }
 0x9ed   :  { %v1157_v40 = vadd.f32 %v1156_v39, %v2302_v53  ;;  %v1169_v44 = vpop.f32.mrf.mxu3 }
 0x9ee   :  { %v1145_v28 = vpop.f32.mrf.mxu1  ;;  %v1170_v0 = vadd.f32 %v1169_v44, %v2307_v14 }
 0x9ef   :  { %v1175_v47 = vrot.slane %v1157_v40, 7 }
 0x9f1   :  { %v1176_v8 = vsel %vm545_vm0, %v1144_v35, %v1175_v47 }
 0x9f2   :  { %v1178_v21 = vadd.f32 %v1176_v8, %v1133_v59 }
 0x9f4   :  { %v1681_v43 = vmul.f32 -1.442695, %v1178_v21  ;;  %v1158_v52 = vpop.f32.mrf.mxu2 }
 0x9f5   :  { %v1171_v27 = vpop.f32.mrf.mxu3 }
 0x9f6   :  { %1848 = vpow2.f32 %v1681_v43 }
 0x9fc   :  { %v1849_v60 = vpop.eup %1848 }
 0x9fd   :  { %v1182_v2 = vadd.f32 1.0, %v1849_v60 }
 0x9ff   :  { %1850 = vrcp.f32 %v1182_v2  ;;  %v1194_v15 = vand.u32 2147483648, %v1182_v2  ;;  %v1192_v50 = vand.u32 2147483647, %v1182_v2  ;;  %vm1188_vm14 = vweird.f32 %v1182_v2 }
 0xa01   :  { %v1195_v57 = vor.u32 1.1754944e-38, %v1194_v15  ;;  %vm1193_vm1 = vcmp.eq.f32.partialorder %v1192_v50, 8.507059e+37 }
 0xa05   :  { %v1851_v41 = vpop.eup %1850 }
 0xa06   :  { %v1184_v9 = vmul.f32 %v1851_v41, %v1182_v2  ;;  %vm1189_vm13 = vweird.f32 %v1851_v41 }
 0xa07   :  { %vm1190_vm15 = vmor %vm1188_vm14, %vm1189_vm13 }
 0xa08   :  { %v1185_v36 = vsub.f32 1.0, %v1184_v9 }
 0xa0a   :  { %v1186_v20 = vmul.f32 %v1851_v41, %v1185_v36 }
 0xa0c   :  { %v1187_v24 = vadd.f32 %v1851_v41, %v1186_v20  ;;  %v1305_v20 = vrot.slane %v1238_v37, 2 }
 0xa0e   :  { %v1191_v6 = vsel %vm1190_vm15, %v1851_v41, %v1187_v24 }
 0xa0f   :  { %v1196_v48 = vsel %vm1193_vm1, %v1195_v57, %v1191_v6 }
 0xa10   :  { %v1198_v13 = vmul.f32 %v1196_v48, %v1170_v0  ;;  %v1205_v46 = vrot.slane %v1196_v48, 1 }
 0xa12   :  { %v1202_v45 = vadd.f32 %v1200_v19, %v1198_v13  ;;  %v1207_v54 = vsub.f32 1.0, %v1205_v46  ;;  %v1209_v58 = vmul.f32 %v1205_v46, %v1129_v12 }
 0xa14   :  { %1852 = vtanh.f32 %v1202_v45 }
 0xa1a   :  { %v1853_v55 = vpop.eup %1852 }
 0xa1b   :  { %v1208_v56 = vmul.f32 %v1853_v55, %v1207_v54 }
 0xa1d   :  { %v1210_v61 = vadd.f32 %v1209_v58, %v1208_v56 }
 0xa1f   :  { %v1211_v62 = vmul.f32 %v1210_v61, %v1210_v61 }
 0xa21   :  { %v1212_v63 = vsel %vm545_vm0, %v1211_v62, 0.0  ;;  %v1770_v62 = vld [vmem:[#allocation12 + $0x38] sm:$0xff] }
 0xa22   :  { %1213 = vadd.xlane.f32.xlu0 %v1212_v63  ;;  %1411 = vmatpush.bf16.msra.mxu3 %v1770_v62  ;;  %v1769_v63 = vld [vmem:[#allocation12 + $0x30] sm:$0xff] }
 0xa26   :  { %1412 = vmatpush.bf16.msra.mxu3 %v1769_v63 }
 0xa95   :  { %v1214_v1 = vpop.xlane.xlu0 %1213 }
 0xa96   :  { %v1215_v3 = vrot.slane %v1214_v1, 4 }
 0xa98   :  { %v1216_v4 = vadd.f32 %v1215_v3, %v1214_v1  ;;  %v1768_v1 = vld [vmem:[#allocation12 + $0x28] sm:$0xff]  ;;  %v1767_v3 = vld [vmem:[#allocation12 + $0x20] sm:$0xff] }
 0xa99   :  { %1413 = vmatpush.bf16.msra.mxu3 %v1768_v1 }
 0xa9a   :  { %v1217_v42 = vrot.slane %v1216_v4, 2 }
 0xa9c   :  { %v1218_v49 = vadd.f32 %v1217_v42, %v1216_v4  ;;  %v1766_v4 = vld [vmem:[#allocation12 + $0x18] sm:$0xff]  ;;  %v1765_v42 = vld [vmem:[#allocation12 + $0x10] sm:$0xff] }
 0xa9d   :  { %1414 = vmatpush.bf16.msra.mxu3 %v1767_v3 }
 0xa9e   :  { %v1219_v5 = vrot.slane %v1218_v49, 1 }
 0xaa0   :  { %v1220_v7 = vadd.f32 %v1219_v5, %v1218_v49  ;;  %v1764_v49 = vld [vmem:[#allocation12 + $0x8] sm:$0xff]  ;;  %v1763_v5 = vld [vmem:[#allocation12] sm:$0xff] }
 0xaa1   :  { %1415 = vmatpush.bf16.msra.mxu3 %v1766_v4 }
 0xaa2   :  { %1783 = vpush %v1220_v7 }
 0xaa5   :  { %1416 = vmatpush.bf16.msra.mxu3 %v1765_v42 }
 0xaa9   :  { %1417 = vmatpush.bf16.msra.mxu3 %v1764_v49 }
 0xaad   :  { %1418 = vmatpush.bf16.msra.mxu3 %v1763_v5 }
 0xad3   :  { %s1784_s22 = spop %1783 }
 0xad4   :  { %v1222_v10 = vstv %s1784_s22 }
 0xad5   :  { %v1223_v16 = vadd.f32 1e-30, %v1222_v10 }
 0xad7   :  { %1854 = vrsqrt.f32 %v1223_v16  ;;  %vm1230_vm3 = vweird.f32 %v1223_v16 }
 0xadd   :  { %v1855_v18 = vpop.eup %1854 }
 0xade   :  { %v1225_v22 = vmul.f32 %v1855_v18, %v1223_v16  ;;  %vm1231_vm2 = vweird.f32 %v1855_v18 }
 0xadf   :  { %vm1232_vm4 = vmor %vm1230_vm3, %vm1231_vm2 }
 0xae0   :  { %v1226_v17 = vmul.f32 %v1855_v18, %v1225_v22 }
 0xae2   :  { %v1227_v23 = vmul.f32 0.5, %v1226_v17 }
 0xae4   :  { %v1228_v25 = vsub.f32 1.5, %v1227_v23 }
 0xae6   :  { %v1229_v29 = vmul.f32 %v1855_v18, %v1228_v25 }
 0xae8   :  { %v1233_v30 = vsel %vm1232_vm4, %v1855_v18, %v1229_v29 }
 0xae9   :  { %v1234_v26 = vmul.f32 %v1233_v30, %v1210_v61 }
 0xaeb   :  { %1235 = vst [vmem:[#allocation15 + $0x6] sm:$0x1] %v1234_v26  ;;  %v1236_v31 = vpack.c.bf16 %v1234_v26, %v1234_v26 }
 0xaed   :  { %1247 = vmatmul.bf16.vlgmr.msra.gmra.mxu0 %v1236_v31  ;;  %1260 = vmatmul.bf16.vlgmr.msra.gmra.mxu1 %v1236_v31 }
 0xaee   :  { %1273 = vmatmul.bf16.vlgmr.msra.gmra.mxu2 %v1236_v31 }
 0xb6a   :  { %v1248_v32 = vpop.f32.mrf.mxu0  ;;  %v1261_v33 = vpop.f32.mrf.mxu1 }
 0xb6b   :  { %v1262_v34 = vadd.f32 %v1261_v33, %v2302_v53  ;;  %v1249_v11 = vadd.f32 %v1248_v32, %v2300_v51  ;;  %v1799_v32 = vld [vmem:[%s2491_s7] ss:$0 sm:$0xff]  ;;  %s2083_s7 = smov [#allocation14]  }
 0xb6c   :  { %s1452_s30 = sshll.u32 %s2083_s7, 4  ;;  %s1453_s30 = int_to_ptr.vmem [resolvable:$true] %s1452_s30 }
 0xb6d   :  { %v1280_v12 = vrot.slane %v1262_v34, 7 }
 0xb6f   :  { %v1281_v38 = vsel %vm545_vm0, %v1249_v11, %v1280_v12 }
 0xb70   :  { %v1283_v39 = vadd.f32 %v1281_v38, %v1238_v37 }
 0xb71   :  { %v1274_v40 = vpop.f32.mrf.mxu2 }
 0xb72   :  { %v1682_v44 = vmul.f32 -1.442695, %v1283_v39  ;;  %v1250_v28 = vpop.f32.mrf.mxu0  ;;  %v1263_v35 = vpop.f32.mrf.mxu1  ;;  %v1275_v41 = vadd.f32 %v1274_v40, %v2307_v14 }
 0xb74   :  { %1856 = vpow2.f32 %v1682_v44 }
 0xb79   :  { %v1276_v47 = vpop.f32.mrf.mxu2 }
 0xb7a   :  { %v1857_v59 = vpop.eup %1856 }
 0xb7b   :  { %v1287_v8 = vadd.f32 1.0, %v1857_v59 }
 0xb7d   :  { %1858 = vrcp.f32 %v1287_v8  ;;  %v1299_v53 = vand.u32 2147483648, %v1287_v8  ;;  %v1297_v51 = vand.u32 2147483647, %v1287_v8  ;;  %vm1293_vm6 = vweird.f32 %v1287_v8 }
 0xb7f   :  { %v1300_v2 = vor.u32 1.1754944e-38, %v1299_v53  ;;  %vm1298_vm8 = vcmp.eq.f32.partialorder %v1297_v51, 8.507059e+37 }
 0xb83   :  { %v1859_v21 = vpop.eup %1858 }
 0xb84   :  { %v1289_v43 = vmul.f32 %v1859_v21, %v1287_v8  ;;  %vm1294_vm5 = vweird.f32 %v1859_v21 }
 0xb85   :  { %vm1295_vm7 = vmor %vm1293_vm6, %vm1294_vm5 }
 0xb86   :  { %v1290_v52 = vsub.f32 1.0, %v1289_v43 }
 0xb88   :  { %v1291_v27 = vmul.f32 %v1859_v21, %v1290_v52 }
 0xb8a   :  { %v1292_v60 = vadd.f32 %v1859_v21, %v1291_v27 }
 0xb8c   :  { %v1296_v9 = vsel %vm1295_vm7, %v1859_v21, %v1292_v60 }
 0xb8d   :  { %v1301_v36 = vsel %vm1298_vm8, %v1300_v2, %v1296_v9 }
 0xb8e   :  { %v1303_v15 = vmul.f32 %v1301_v36, %v1275_v41  ;;  %v1310_v24 = vrot.slane %v1301_v36, 1 }
 0xb90   :  { %v1307_v50 = vadd.f32 %v1305_v20, %v1303_v15  ;;  %v1312_v57 = vsub.f32 1.0, %v1310_v24  ;;  %v1314_v48 = vmul.f32 %v1310_v24, %v1234_v26 }
 0xb92   :  { %1860 = vtanh.f32 %v1307_v50 }
 0xb98   :  { %v1861_v0 = vpop.eup %1860 }
 0xb99   :  { %v1313_v6 = vmul.f32 %v1861_v0, %v1312_v57 }
 0xb9b   :  { %v1315_v13 = vadd.f32 %v1314_v48, %v1313_v6 }
 0xb9d   :  { %v1316_v19 = vmul.f32 %v1315_v13, %v1315_v13 }
 0xb9f   :  { %v1317_v45 = vsel %vm545_vm0, %v1316_v19, 0.0 }
 0xba0   :  { %1318 = vadd.xlane.f32.xlu1 %v1317_v45 }
 0xc13   :  { %v1319_v46 = vpop.xlane.xlu1 %1318 }
 0xc14   :  { %v1320_v54 = vrot.slane %v1319_v46, 4 }
 0xc16   :  { %v1321_v14 = vadd.f32 %v1320_v54, %v1319_v46 }
 0xc18   :  { %v1322_v55 = vrot.slane %v1321_v14, 2 }
 0xc1a   :  { %v1323_v56 = vadd.f32 %v1322_v55, %v1321_v14 }
 0xc1c   :  { %v1324_v58 = vrot.slane %v1323_v56, 1 }
 0xc1e   :  { %v1325_v61 = vadd.f32 %v1324_v58, %v1323_v56 }
 0xc20   :  { %1785 = vpush %v1325_v61 }
 0xc51   :  { %s1786_s23 = spop %1785 }
 0xc52   :  { %v1327_v7 = vstv %s1786_s23 }
 0xc53   :  { %v1328_v10 = vadd.f32 1e-30, %v1327_v7 }
 0xc55   :  { %1862 = vrsqrt.f32 %v1328_v10  ;;  %vm1335_vm9 = vweird.f32 %v1328_v10 }
 0xc5b   :  { %v1863_v16 = vpop.eup %1862 }
 0xc5c   :  { %v1330_v18 = vmul.f32 %v1863_v16, %v1328_v10  ;;  %vm1336_vm0 = vweird.f32 %v1863_v16 }
 0xc5d   :  { %vm1337_vm10 = vmor %vm1335_vm9, %vm1336_vm0 }
 0xc5e   :  { %v1331_v22 = vmul.f32 %v1863_v16, %v1330_v18 }
 0xc60   :  { %v1332_v17 = vmul.f32 0.5, %v1331_v22 }
 0xc62   :  { %v1333_v23 = vsub.f32 1.5, %v1332_v17 }
 0xc64   :  { %v1334_v25 = vmul.f32 %v1863_v16, %v1333_v23 }
 0xc66   :  { %v1338_v29 = vsel %vm1337_vm10, %v1863_v16, %v1334_v25 }
 0xc67   :  { %v1339_v30 = vmul.f32 %v1338_v29, %v1315_v13 }
 0xc69   :  { %1340 = vst [vmem:[#allocation15 + $0x7] sm:$0x1] %v1339_v30 }
 0xc6a   :  { %1468 = dma.vmem_to_hbm [thread:$0]  %s1464_s27, 128, %s1466_s29, [#allocation16]  }
 0xc70   :  { %v1341_v26 = vld [vmem:[#allocation15] sm:$0xff] }
 0xc71   :  { %v1342_v31 = vpack.c.bf16 %v1341_v26, %v1341_v26 }
 0xc73   :  { %1419 = vmatmul.bf16.vlgmr.msra.gmra.mxu3 %v1342_v31 }
 0xcf6   :  { %v1420_v33 = vpop.f32.mrf.mxu3 }
 0xcf7   :  { %v1421_v34 = vadd.f32 %v1799_v32, %v1420_v33 }
 0xcf9   :  { %1424 = vmax.xlane.f32.xlu2 %v1421_v34 }
 0xcfe   :  { %v1422_v11 = vpop.f32.mrf.mxu3 }
 0xd6c   :  { %v1425_v12 = vpop.xlane.xlu2 %1424 }
 0xd6d   :  { %v1426_v37 = vsub.f32 %v1421_v34, %v1425_v12 }
 0xd6f   :  { %v1427_v38 = vmul.f32 1.442695, %v1426_v37 }
 0xd71   :  { %1864 = vpow2.f32 %v1427_v38 }
 0xd77   :  { %v1865_v39 = vpop.eup %1864 }
 0xd78   :  { %1429 = vadd.xlane.f32.xlu0 %v1865_v39 }
 0xdeb   :  { %v1430_v40 = vpop.xlane.xlu0 %1429 }
 0xdec   :  { %1866 = vrcp.f32 %v1430_v40  ;;  %v1442_v47 = vand.u32 2147483648, %v1430_v40  ;;  %v1440_v8 = vand.u32 2147483647, %v1430_v40  ;;  %vm1436_vm12 = vweird.f32 %v1430_v40 }
 0xdee   :  { %v1443_v43 = vor.u32 1.1754944e-38, %v1442_v47  ;;  %vm1441_vm14 = vcmp.eq.f32.partialorder %v1440_v8, 8.507059e+37 }
 0xdf2   :  { %v1867_v44 = vpop.eup %1866 }
 0xdf3   :  { %v1432_v28 = vmul.f32 %v1867_v44, %v1430_v40  ;;  %vm1437_vm11 = vweird.f32 %v1867_v44 }
 0xdf4   :  { %vm1438_vm13 = vmor %vm1436_vm12, %vm1437_vm11 }
 0xdf5   :  { %v1433_v35 = vsub.f32 1.0, %v1432_v28 }
 0xdf7   :  { %v1434_v59 = vmul.f32 %v1867_v44, %v1433_v35 }
 0xdf9   :  { %v1435_v21 = vadd.f32 %v1867_v44, %v1434_v59 }
 0xdfb   :  { %v1439_v52 = vsel %vm1438_vm13, %v1867_v44, %v1435_v21 }
 0xdfc   :  { %v1444_v53 = vsel %vm1441_vm14, %v1443_v43, %v1439_v52 }
 0xdfd   :  { %v1445_v27 = vmul.f32 %v1865_v39, %v1444_v53 }
 0xdff   :  { %1446 = vst [vmem:[#allocation14] sm:$0xff] %v1445_v27 }
 0xe00   :  { %1457 = dma.vmem_to_hbm [thread:$0]  %s1453_s30, 128, %s1455_s10, [#allocation5]  }
 0xe01   :  { %2068 = dma.done.wait [#allocation5], 128  }
 0xe02   :  { %2069 = vsyncadd [#allocation5], 4294967168 }
 0xe03   :  { %2070 = dma.done.wait [#allocation16], 128  }
 0xe04   :  { %2071 = vsyncadd [#allocation16], 4294967168 }
 0xe05   :  { %1477 = vsyncpa [#allocation4], 1 }
 0xe06   :  { %1478 = vsyncpa [#allocation7], 1 }
 0xe07   :  { %1479 = vsyncpa [#allocation10], 1 }
 0xe08   :  { %1480 = vsyncpa [#allocation13], 1 }
 0xe09   :  { %1481 = vsyncpa [#allocation5], 1 }
 0xe0a   :  { %1482 = vsyncpa [#allocation16], 1 }

</bundles_post_ra>
